<compile_context>
chip_gen: v7x
topology: tpu7x:2x2x1
jax: 0.10.0
libtpu: 0.0.40
codegen_flags: <defaults>
</compile_context>

<pallas_src>
import numpy as np

import jax
import jax.numpy as jnp
from jax import lax
from jax.experimental import pallas as pl
from jax.experimental.pallas import tpu as pltpu

_BN_EPS = 1e-5                      # nn.BatchNorm2d default
MXU_IN_DTYPE = jnp.bfloat16         # conv-matmul operand dtype (f32 accumulate)


# ----------------------------------------------------------------------------
# Static banded conv matrices (wrapper side, pure layout work on parameters).
#
# Stored representation of a layer's output: (N*H, Wi*Co) with lane index
# w*Co + c.  After the (1,2) max-pool only even-w lane groups hold valid data;
# the next layer's matrix reads source lane s*(w+dw)*Ci + ci with s=2, so the
# pooled-out (odd) groups simply have all-zero rows -- "compaction" is folded
# into the static weights and costs no kernel op.  Width zero-padding ==
# missing entries.  The conv bias is dropped: training-mode BN subtracts the
# batch mean, which cancels a per-channel constant exactly.
# ----------------------------------------------------------------------------
def _build_conv_mats(params, ksizes, C0, W0):
    mats, meta = [], []
    Wi, Ci, Lin, s = W0, C0, W0 * C0, 1
    for (w, _b, _g, _be), K in zip(params, ksizes):
        Co = int(w.shape[0])
        p = K // 2
        wnp = np.asarray(w, np.float32)                       # (Co, Ci, K, K)
        A = np.zeros((K, Lin, Wi * Co), np.float32)
        for t in range(K):                                    # dh tap (t = dh + p)
            for wo in range(Wi):                              # output width pos
                for dw in range(-p, p + 1):
                    ws = wo + dw
                    if 0 <= ws < Wi:
                        r0 = s * ws * Ci
                        A[t, r0:r0 + Ci, wo * Co:(wo + 1) * Co] = \
                            wnp[:, :, t, dw + p].T
        mats.append(jnp.asarray(A.reshape(K * Lin, Wi * Co), dtype=MXU_IN_DTYPE))
        meta.append((K, Lin, Wi, Co))
        # Next layer's input = this layer's pooled (uncompacted) output.
        Lin, Ci, Wi, s = Wi * Co, Co, Wi // 2, 2
    return mats, meta


# ----------------------------------------------------------------------------
# Fused kernel: Conv -> BN(batch stats) -> ReLU -> MaxPool(1,2), all layers.
# ----------------------------------------------------------------------------
def _build_encoder_kernel(N, H, layer_meta):
    NH = N * H
    L = len(layer_meta)

    def kernel(x_ref, gb_ref, *rest):
        a_refs = rest[:L]
        out_ref = rest[L]

        # In-kernel row metadata (no HBM metadata DMA): image-row index of
        # every sample row.  Built at full lane width, then narrowed.
        h_idx = jnp.concatenate(
            [lax.broadcasted_iota(jnp.int32, (H, 128), 0)] * N, axis=0)[:, :1]

        a = x_ref[...]                                        # (NH, Lin_1) f32
        for l, (K, Lin, Wi, Co) in enumerate(layer_meta):
            p = K // 2
            lanes = Wi * Co

            # ---- Conv2d (SAME, stride 1):  y = sum_dh shift_dh(a) @ A[dh] --
            # Only the dh (image-row) shift is dynamic; dw taps, zero padding
            # and the previous pool's stride-2 read live in the static A.
            y = None
            for t, dh in enumerate(range(-p, p + 1)):
                if dh == 0:
                    at = a
                else:
                    at = jnp.roll(a, -dh, axis=0)             # row r -> a[r+dh]
                    valid = jnp.logical_and(h_idx + dh >= 0, h_idx + dh <= H - 1)
                    at = jnp.where(valid, at, 0.0)            # zero padding / image edge
                Ad = a_refs[l][t * Lin:(t + 1) * Lin, :]      # (Lin, lanes), bf16
                d = jnp.dot(at.astype(MXU_IN_DTYPE), Ad,
                            preferred_element_type=jnp.float32)
                y = d if y is None else y + d                 # (NH, lanes) f32

            # ---- BatchNorm2d with training-mode batch statistics -----------
            gamma = gb_ref[l:l + 1, :Co]                      # (1, Co)
            beta = gb_ref[L + l:L + l + 1, :Co]
            # Channel group-sum (G) and channel-tiling (GT) matrices, built
            # in-kernel from iota + lane/sublane concatenation.
            eye = jnp.where(
                lax.broadcasted_iota(jnp.int32, (Co, Co), 0)
                == lax.broadcasted_iota(jnp.int32, (Co, Co), 1), 1.0, 0.0)
            G = jnp.concatenate([eye] * Wi, axis=0)           # (lanes, Co)
            GT = jnp.concatenate([eye] * Wi, axis=1)          # (Co, lanes)

            s1 = jnp.sum(y, axis=0, keepdims=True)            # (1, lanes)
            s2 = jnp.sum(y * y, axis=0, keepdims=True)
            stats = jnp.dot(jnp.concatenate([s1, s2], axis=0), G,
                            preferred_element_type=jnp.float32)   # (2, Co)
            inv_cnt = 1.0 / float(NH * Wi)
            mean = stats[0:1, :] * inv_cnt
            var = stats[1:2, :] * inv_cnt - mean * mean       # biased, as torch
            scale_c = lax.rsqrt(var + _BN_EPS) * gamma
            shift_c = beta - mean * scale_c
            st = jnp.dot(jnp.concatenate([scale_c, shift_c], axis=0), GT,
                         preferred_element_type=jnp.float32)  # (2, lanes)

            # ---- ReLU + MaxPool2d((1,2),(1,2)) ------------------------------
            z = jnp.maximum(y * st[0:1, :] + st[1:2, :], 0.0)
            # Width pool = lane-level max with the next Co-wide lane group;
            # valid results land on even-w groups, odd groups are don't-care
            # (their rows in the next layer's A are zero).
            a = jnp.maximum(z, jnp.roll(z, -Co, axis=1))

        out_ref[...] = a        # dense (NH, W_last*C_last) 128-lane store

    return kernel


# ----------------------------------------------------------------------------
# Wrapper: layout glue only, one pallas_call.
# ----------------------------------------------------------------------------
def cnn2d_encoder(x_nchw, params, kernel_sizes):
    N, C0, H, W0 = x_nchw.shape
    L = len(params)
    ksizes = [int(k) for k in kernel_sizes][:L]     # extra kernel_size entries
                                                    # are ignored (module's zip)
    assert all(k % 2 == 1 for k in ksizes), "odd kernel sizes expected"
    assert W0 % (2 ** L) == 0, "W must be divisible by 2**num_layers"
    NH = N * H

    # NCHW -> (N*H, W*C): rows = batch*image-row, lanes = width*channels.
    x_rows = jnp.transpose(x_nchw, (0, 2, 3, 1)).reshape(NH, W0 * C0)
    x_rows = x_rows.astype(jnp.float32)

    A_mats, meta = _build_conv_mats(params, ksizes, C0, W0)
    _, _, W_last, C_last = meta[-1]
    out_lanes = W_last * C_last

    # gamma/beta packed into a single (8, 128)-aligned f32 tile.
    gb_np = np.zeros((max(8, 2 * L), max(128, max(m[3] for m in meta))),
                     np.float32)
    for l, (_w, _b, g, be) in enumerate(params):
        gb_np[l, :g.shape[0]] = np.asarray(g, np.float32)
        gb_np[L + l, :be.shape[0]] = np.asarray(be, np.float32)
    gb = jnp.asarray(gb_np)

    kernel = _build_encoder_kernel(N, H, meta)

    def full2d(shape):
        return pl.BlockSpec(shape, lambda i: (0, 0))

    out = pl.pallas_call(
        kernel,
        out_shape=jax.ShapeDtypeStruct((NH, out_lanes), jnp.float32),
        grid=(1,),
        in_specs=[full2d(x_rows.shape), full2d(gb.shape)]
                 + [full2d(A.shape) for A in A_mats],
        out_specs=full2d((NH, out_lanes)),
        # Working set ~0.5 MiB: far below the scoped-VMEM default on every TPU
        # generation, so no vmem_limit_bytes override / per-chip tuning here.
        compiler_params=pltpu.CompilerParams(
            dimension_semantics=("arbitrary",)),
    )(x_rows, gb, *A_mats)

    # Valid pooled outputs sit on the even width lane-groups of the dense tile.
    o = out.reshape(N, H, W_last, C_last)[:, :, ::2, :]       # (N,H,W_out,C)
    return jnp.transpose(o, (0, 3, 1, 2))                     # -> NCHW


# ----------------------------------------------------------------------------
# Deterministic parameter initialization (shapes as in the module __init__).
# ----------------------------------------------------------------------------
def init_params(key, kernel_sizes, conv_channels):
    params = []
    for i, (cin, cout) in enumerate(zip(conv_channels, conv_channels[1:])):
        k = kernel_sizes[i]
        key, k1, k2 = jax.random.split(key, 3)
        fan_in = cin * k * k
        w = jax.random.normal(k1, (cout, cin, k, k), jnp.float32) / jnp.sqrt(fan_in)
        b = 0.1 * jax.random.normal(k2, (cout,), jnp.float32)
        gamma = jnp.ones((cout,), jnp.float32)   # BatchNorm2d weight init
        beta = jnp.zeros((cout,), jnp.float32)   # BatchNorm2d bias init
        params.append((w, b, gamma, beta))
    return params


# ----------------------------------------------------------------------------
# Pure-JAX reference (mirrors the PyTorch forward in strict f32, bias incl.).
# ----------------------------------------------------------------------------
def ref_forward(x_nchw, params):
    y = x_nchw
    for (w, b, g, be) in params:
        y = lax.conv_general_dilated(
            y, w, window_strides=(1, 1), padding="SAME",
            dimension_numbers=("NCHW", "OIHW", "NCHW"),
            precision=lax.Precision.HIGHEST) + b[None, :, None, None]
        mean = jnp.mean(y, axis=(0, 2, 3), keepdims=True)
        var = jnp.mean((y - mean) ** 2, axis=(0, 2, 3), keepdims=True)
        y = (y - mean) * lax.rsqrt(var + _BN_EPS) * g[None, :, None, None] \
            + be[None, :, None, None]
        y = jnp.maximum(y, 0.0)
        y = jnp.maximum(y[:, :, :, 0::2], y[:, :, :, 1::2])   # MaxPool2d((1,2),(1,2))
    return y


if __name__ == "__main__":
    kernel_sizes = [3, 3, 3, 3]          # 4 entries, 3 layers -> last unused,
    conv_channels = [1, 8, 16, 32]       # exactly as in the module defaults.

    key = jax.random.PRNGKey(0)
    key, kx = jax.random.split(key)
    x = jax.random.normal(kx, (2, 1, 16, 16), jnp.float32)    # NCHW

    params = init_params(key, kernel_sizes, conv_channels)

    fwd = jax.jit(lambda xx: cnn2d_encoder(xx, params, kernel_sizes))
    out = jax.block_until_ready(fwd(x))

    expected = jax.block_until_ready(ref_forward(x, params))
    assert out.shape == (2, 32, 16, 2), out.shape
    # bf16 MXU operands leave ~1e-2 worst-case deviation from the strict-f32
    # reference after three stacked BN-normalised layers (operand quantisation
    # only; accumulation stays f32).  f32 operands recover ~1e-4 parity.
    tol = 5e-2 if MXU_IN_DTYPE == jnp.bfloat16 else 1e-3
    max_err = float(jnp.max(jnp.abs(out - expected)))
    assert jnp.allclose(out, expected, rtol=tol, atol=tol), max_err
    print("KERNEL_OK")
</pallas_src>

<mosaic_0001>
module attributes {stable_mosaic.version = 11 : i64} {
  func.func @kernel(%arg0: i32, %arg1: memref<32x16xf32, #tpu.memory_space<vmem>>, %arg2: memref<8x128xf32, #tpu.memory_space<vmem>>, %arg3: memref<48x128xbf16, #tpu.memory_space<vmem>>, %arg4: memref<384x128xbf16, #tpu.memory_space<vmem>>, %arg5: memref<384x128xbf16, #tpu.memory_space<vmem>>, %arg6: memref<32x128xf32, #tpu.memory_space<vmem>>) attributes {dimension_semantics = [#tpu.dimension_semantics<arbitrary>], iteration_bounds = array<i64: 1>, scalar_prefetch = 0 : i64, scratch_operands = 0 : i64, tpu.core_type = #tpu.core_type<tc>, window_params = [{pipeline_mode = #tpu.pipeline_mode<synchronous>, transform_indices = @transform_0, window_bounds = array<i64: 32, 16>}, {pipeline_mode = #tpu.pipeline_mode<synchronous>, transform_indices = @transform_1, window_bounds = array<i64: 8, 128>}, {pipeline_mode = #tpu.pipeline_mode<synchronous>, transform_indices = @transform_2, window_bounds = array<i64: 48, 128>}, {pipeline_mode = #tpu.pipeline_mode<synchronous>, transform_indices = @transform_3, window_bounds = array<i64: 384, 128>}, {pipeline_mode = #tpu.pipeline_mode<synchronous>, transform_indices = @transform_4, window_bounds = array<i64: 384, 128>}, {pipeline_mode = #tpu.pipeline_mode<synchronous>, transform_indices = @transform_5, window_bounds = array<i64: 32, 128>}]} {
    %0 = tpu.iota {dimensions = array<i32: 0>} : vector<16x128xi32>
    %1 = tpu.concatenate %0, %0 in 0 : vector<16x128xi32>, vector<16x128xi32> -> vector<32x128xi32>
    %2 = vector.extract_strided_slice %1 {offsets = [0, 0], sizes = [32, 1], strides = [1, 1]} : vector<32x128xi32> to vector<32x1xi32>
    %c0 = arith.constant 0 : index
    %c0_0 = arith.constant 0 : index
    %3 = vector.load %arg1[%c0, %c0_0] : memref<32x16xf32, #tpu.memory_space<vmem>>, vector<32x16xf32>
    %4 = vector.extract_strided_slice %3 {offsets = [31, 0], sizes = [1, 16], strides = [1, 1]} : vector<32x16xf32> to vector<1x16xf32>
    %5 = vector.extract_strided_slice %3 {offsets = [0, 0], sizes = [31, 16], strides = [1, 1]} : vector<32x16xf32> to vector<31x16xf32>
    %6 = tpu.concatenate %4, %5 in 0 : vector<1x16xf32>, vector<31x16xf32> -> vector<32x16xf32>
    %c-1_i32 = arith.constant -1 : i32
    %7 = vector.broadcast %c-1_i32 : i32 to vector<32x1xi32>
    %8 = arith.addi %2, %7 : vector<32x1xi32>
    %c0_i32 = arith.constant 0 : i32
    %9 = vector.broadcast %c0_i32 : i32 to vector<32x1xi32>
    %10 = arith.cmpi sge, %8, %9 : vector<32x1xi32>
    %c-1_i32_1 = arith.constant -1 : i32
    %11 = vector.broadcast %c-1_i32_1 : i32 to vector<32x1xi32>
    %12 = arith.addi %2, %11 : vector<32x1xi32>
    %c15_i32 = arith.constant 15 : i32
    %13 = vector.broadcast %c15_i32 : i32 to vector<32x1xi32>
    %14 = arith.cmpi sle, %12, %13 : vector<32x1xi32>
    %15 = arith.andi %10, %14 : vector<32x1xi1>
    %cst = arith.constant 0.000000e+00 : f32
    %16 = vector.shape_cast %15 : vector<32x1xi1> to vector<32x1xi1>
    %17 = vector.broadcast %16 : vector<32x1xi1> to vector<32x16xi1>
    %18 = vector.broadcast %cst : f32 to vector<32x16xf32>
    %19 = arith.select %17, %6, %18 : vector<32x16xi1>, vector<32x16xf32>
    %c0_2 = arith.constant 0 : index
    %c0_3 = arith.constant 0 : index
    %20 = vector.load %arg3[%c0_2, %c0_3] : memref<48x128xbf16, #tpu.memory_space<vmem>>, vector<16x128xbf16>
    %21 = arith.truncf %19 : vector<32x16xf32> to vector<32x16xbf16>
    %cst_4 = arith.constant dense<0.000000e+00> : vector<32x128xf32>
    %22 = tpu.matmul %21, %20, %cst_4 {dimension_numbers = #tpu.dot_dimension_numbers<[1], [0], [0], [1], [0, 0, 1, 1], [], []>} : vector<32x16xbf16>, vector<16x128xbf16>, vector<32x128xf32> -> vector<32x128xf32>
    %c16 = arith.constant 16 : index
    %c0_5 = arith.constant 0 : index
    %23 = vector.load %arg3[%c16, %c0_5] : memref<48x128xbf16, #tpu.memory_space<vmem>>, vector<16x128xbf16>
    %24 = arith.truncf %3 : vector<32x16xf32> to vector<32x16xbf16>
    %cst_6 = arith.constant dense<0.000000e+00> : vector<32x128xf32>
    %25 = tpu.matmul %24, %23, %cst_6 {dimension_numbers = #tpu.dot_dimension_numbers<[1], [0], [0], [1], [0, 0, 1, 1], [], []>} : vector<32x16xbf16>, vector<16x128xbf16>, vector<32x128xf32> -> vector<32x128xf32>
    %26 = arith.addf %22, %25 : vector<32x128xf32>
    %27 = vector.extract_strided_slice %3 {offsets = [1, 0], sizes = [31, 16], strides = [1, 1]} : vector<32x16xf32> to vector<31x16xf32>
    %28 = vector.extract_strided_slice %3 {offsets = [0, 0], sizes = [1, 16], strides = [1, 1]} : vector<32x16xf32> to vector<1x16xf32>
    %29 = tpu.concatenate %27, %28 in 0 : vector<31x16xf32>, vector<1x16xf32> -> vector<32x16xf32>
    %c1_i32 = arith.constant 1 : i32
    %30 = vector.broadcast %c1_i32 : i32 to vector<32x1xi32>
    %31 = arith.addi %2, %30 : vector<32x1xi32>
    %c0_i32_7 = arith.constant 0 : i32
    %32 = vector.broadcast %c0_i32_7 : i32 to vector<32x1xi32>
    %33 = arith.cmpi sge, %31, %32 : vector<32x1xi32>
    %c1_i32_8 = arith.constant 1 : i32
    %34 = vector.broadcast %c1_i32_8 : i32 to vector<32x1xi32>
    %35 = arith.addi %2, %34 : vector<32x1xi32>
    %c15_i32_9 = arith.constant 15 : i32
    %36 = vector.broadcast %c15_i32_9 : i32 to vector<32x1xi32>
    %37 = arith.cmpi sle, %35, %36 : vector<32x1xi32>
    %38 = arith.andi %33, %37 : vector<32x1xi1>
    %cst_10 = arith.constant 0.000000e+00 : f32
    %39 = vector.shape_cast %38 : vector<32x1xi1> to vector<32x1xi1>
    %40 = vector.broadcast %39 : vector<32x1xi1> to vector<32x16xi1>
    %41 = vector.broadcast %cst_10 : f32 to vector<32x16xf32>
    %42 = arith.select %40, %29, %41 : vector<32x16xi1>, vector<32x16xf32>
    %c32 = arith.constant 32 : index
    %c0_11 = arith.constant 0 : index
    %43 = vector.load %arg3[%c32, %c0_11] : memref<48x128xbf16, #tpu.memory_space<vmem>>, vector<16x128xbf16>
    %44 = arith.truncf %42 : vector<32x16xf32> to vector<32x16xbf16>
    %cst_12 = arith.constant dense<0.000000e+00> : vector<32x128xf32>
    %45 = tpu.matmul %44, %43, %cst_12 {dimension_numbers = #tpu.dot_dimension_numbers<[1], [0], [0], [1], [0, 0, 1, 1], [], []>} : vector<32x16xbf16>, vector<16x128xbf16>, vector<32x128xf32> -> vector<32x128xf32>
    %46 = arith.addf %26, %45 : vector<32x128xf32>
    %c0_13 = arith.constant 0 : index
    %c0_14 = arith.constant 0 : index
    %47 = vector.load %arg2[%c0_13, %c0_14] : memref<8x128xf32, #tpu.memory_space<vmem>>, vector<1x8xf32>
    %c3 = arith.constant 3 : index
    %c0_15 = arith.constant 0 : index
    %48 = vector.load %arg2[%c3, %c0_15] : memref<8x128xf32, #tpu.memory_space<vmem>>, vector<1x8xf32>
    %49 = tpu.iota {dimensions = array<i32: 0>} : vector<8x8xi32>
    %50 = tpu.iota {dimensions = array<i32: 1>} : vector<8x8xi32>
    %51 = arith.cmpi eq, %49, %50 : vector<8x8xi32>
    %cst_16 = arith.constant 1.000000e+00 : f32
    %cst_17 = arith.constant 0.000000e+00 : f32
    %52 = vector.broadcast %cst_16 : f32 to vector<8x8xf32>
    %53 = vector.broadcast %cst_17 : f32 to vector<8x8xf32>
    %54 = arith.select %51, %52, %53 : vector<8x8xi1>, vector<8x8xf32>
    %55 = tpu.concatenate %54, %54, %54, %54, %54, %54, %54, %54, %54, %54, %54, %54, %54, %54, %54, %54 in 0 : vector<8x8xf32>, vector<8x8xf32>, vector<8x8xf32>, vector<8x8xf32>, vector<8x8xf32>, vector<8x8xf32>, vector<8x8xf32>, vector<8x8xf32>, vector<8x8xf32>, vector<8x8xf32>, vector<8x8xf32>, vector<8x8xf32>, vector<8x8xf32>, vector<8x8xf32>, vector<8x8xf32>, vector<8x8xf32> -> vector<128x8xf32>
    %56 = tpu.concatenate %54, %54, %54, %54, %54, %54, %54, %54, %54, %54, %54, %54, %54, %54, %54, %54 in 1 : vector<8x8xf32>, vector<8x8xf32>, vector<8x8xf32>, vector<8x8xf32>, vector<8x8xf32>, vector<8x8xf32>, vector<8x8xf32>, vector<8x8xf32>, vector<8x8xf32>, vector<8x8xf32>, vector<8x8xf32>, vector<8x8xf32>, vector<8x8xf32>, vector<8x8xf32>, vector<8x8xf32>, vector<8x8xf32> -> vector<8x128xf32>
    %cst_18 = arith.constant dense<0.000000e+00> : vector<128xf32>
    %57 = vector.multi_reduction <add>, %46, %cst_18 [0] : vector<32x128xf32> to vector<128xf32>
    %58 = vector.shape_cast %57 : vector<128xf32> to vector<1x128xf32>
    %59 = arith.mulf %46, %46 : vector<32x128xf32>
    %cst_19 = arith.constant dense<0.000000e+00> : vector<128xf32>
    %60 = vector.multi_reduction <add>, %59, %cst_19 [0] : vector<32x128xf32> to vector<128xf32>
    %61 = vector.shape_cast %60 : vector<128xf32> to vector<1x128xf32>
    %62 = tpu.concatenate %58, %61 in 0 : vector<1x128xf32>, vector<1x128xf32> -> vector<2x128xf32>
    %cst_20 = arith.constant dense<0.000000e+00> : vector<2x8xf32>
    %63 = tpu.matmul %62, %55, %cst_20 {dimension_numbers = #tpu.dot_dimension_numbers<[1], [0], [0], [1], [0, 0, 1, 1], [], []>} : vector<2x128xf32>, vector<128x8xf32>, vector<2x8xf32> -> vector<2x8xf32>
    %64 = vector.extract_strided_slice %63 {offsets = [0, 0], sizes = [1, 8], strides = [1, 1]} : vector<2x8xf32> to vector<1x8xf32>
    %cst_21 = arith.constant 0.001953125 : f32
    %65 = vector.broadcast %cst_21 : f32 to vector<1x8xf32>
    %66 = arith.mulf %64, %65 : vector<1x8xf32>
    %67 = vector.extract_strided_slice %63 {offsets = [1, 0], sizes = [1, 8], strides = [1, 1]} : vector<2x8xf32> to vector<1x8xf32>
    %cst_22 = arith.constant 0.001953125 : f32
    %68 = vector.broadcast %cst_22 : f32 to vector<1x8xf32>
    %69 = arith.mulf %67, %68 : vector<1x8xf32>
    %70 = arith.mulf %66, %66 : vector<1x8xf32>
    %71 = arith.subf %69, %70 : vector<1x8xf32>
    %cst_23 = arith.constant 9.99999974E-6 : f32
    %72 = vector.broadcast %cst_23 : f32 to vector<1x8xf32>
    %73 = arith.addf %71, %72 : vector<1x8xf32>
    %74 = math.rsqrt %73 : vector<1x8xf32>
    %75 = arith.mulf %74, %47 : vector<1x8xf32>
    %76 = arith.mulf %66, %75 : vector<1x8xf32>
    %77 = arith.subf %48, %76 : vector<1x8xf32>
    %78 = tpu.concatenate %75, %77 in 0 : vector<1x8xf32>, vector<1x8xf32> -> vector<2x8xf32>
    %cst_24 = arith.constant dense<0.000000e+00> : vector<2x128xf32>
    %79 = tpu.matmul %78, %56, %cst_24 {dimension_numbers = #tpu.dot_dimension_numbers<[1], [0], [0], [1], [0, 0, 1, 1], [], []>} : vector<2x8xf32>, vector<8x128xf32>, vector<2x128xf32> -> vector<2x128xf32>
    %80 = vector.extract_strided_slice %79 {offsets = [0, 0], sizes = [1, 128], strides = [1, 1]} : vector<2x128xf32> to vector<1x128xf32>
    %81 = vector.broadcast %80 : vector<1x128xf32> to vector<32x128xf32>
    %82 = arith.mulf %46, %81 : vector<32x128xf32>
    %83 = vector.extract_strided_slice %79 {offsets = [1, 0], sizes = [1, 128], strides = [1, 1]} : vector<2x128xf32> to vector<1x128xf32>
    %84 = vector.broadcast %83 : vector<1x128xf32> to vector<32x128xf32>
    %85 = arith.addf %82, %84 : vector<32x128xf32>
    %cst_25 = arith.constant 0.000000e+00 : f32
    %86 = vector.broadcast %cst_25 : f32 to vector<32x128xf32>
    %87 = arith.maximumf %85, %86 : vector<32x128xf32>
    %88 = vector.extract_strided_slice %87 {offsets = [0, 8], sizes = [32, 120], strides = [1, 1]} : vector<32x128xf32> to vector<32x120xf32>
    %89 = vector.extract_strided_slice %87 {offsets = [0, 0], sizes = [32, 8], strides = [1, 1]} : vector<32x128xf32> to vector<32x8xf32>
    %90 = tpu.concatenate %88, %89 in 1 : vector<32x120xf32>, vector<32x8xf32> -> vector<32x128xf32>
    %91 = arith.maximumf %87, %90 : vector<32x128xf32>
    %92 = vector.extract_strided_slice %91 {offsets = [31, 0], sizes = [1, 128], strides = [1, 1]} : vector<32x128xf32> to vector<1x128xf32>
    %93 = vector.extract_strided_slice %91 {offsets = [0, 0], sizes = [31, 128], strides = [1, 1]} : vector<32x128xf32> to vector<31x128xf32>
    %94 = tpu.concatenate %92, %93 in 0 : vector<1x128xf32>, vector<31x128xf32> -> vector<32x128xf32>
    %c-1_i32_26 = arith.constant -1 : i32
    %95 = vector.broadcast %c-1_i32_26 : i32 to vector<32x1xi32>
    %96 = arith.addi %2, %95 : vector<32x1xi32>
    %c0_i32_27 = arith.constant 0 : i32
    %97 = vector.broadcast %c0_i32_27 : i32 to vector<32x1xi32>
    %98 = arith.cmpi sge, %96, %97 : vector<32x1xi32>
    %c-1_i32_28 = arith.constant -1 : i32
    %99 = vector.broadcast %c-1_i32_28 : i32 to vector<32x1xi32>
    %100 = arith.addi %2, %99 : vector<32x1xi32>
    %c15_i32_29 = arith.constant 15 : i32
    %101 = vector.broadcast %c15_i32_29 : i32 to vector<32x1xi32>
    %102 = arith.cmpi sle, %100, %101 : vector<32x1xi32>
    %103 = arith.andi %98, %102 : vector<32x1xi1>
    %cst_30 = arith.constant 0.000000e+00 : f32
    %104 = vector.shape_cast %103 : vector<32x1xi1> to vector<32x1xi1>
    %105 = vector.broadcast %104 : vector<32x1xi1> to vector<32x128xi1>
    %106 = vector.broadcast %cst_30 : f32 to vector<32x128xf32>
    %107 = arith.select %105, %94, %106 : vector<32x128xi1>, vector<32x128xf32>
    %c0_31 = arith.constant 0 : index
    %c0_32 = arith.constant 0 : index
    %108 = vector.load %arg4[%c0_31, %c0_32] : memref<384x128xbf16, #tpu.memory_space<vmem>>, vector<128x128xbf16>
    %109 = arith.truncf %107 : vector<32x128xf32> to vector<32x128xbf16>
    %cst_33 = arith.constant dense<0.000000e+00> : vector<32x128xf32>
    %110 = tpu.matmul %109, %108, %cst_33 {dimension_numbers = #tpu.dot_dimension_numbers<[1], [0], [0], [1], [0, 0, 1, 1], [], []>} : vector<32x128xbf16>, vector<128x128xbf16>, vector<32x128xf32> -> vector<32x128xf32>
    %c128 = arith.constant 128 : index
    %c0_34 = arith.constant 0 : index
    %111 = vector.load %arg4[%c128, %c0_34] : memref<384x128xbf16, #tpu.memory_space<vmem>>, vector<128x128xbf16>
    %112 = arith.truncf %91 : vector<32x128xf32> to vector<32x128xbf16>
    %cst_35 = arith.constant dense<0.000000e+00> : vector<32x128xf32>
    %113 = tpu.matmul %112, %111, %cst_35 {dimension_numbers = #tpu.dot_dimension_numbers<[1], [0], [0], [1], [0, 0, 1, 1], [], []>} : vector<32x128xbf16>, vector<128x128xbf16>, vector<32x128xf32> -> vector<32x128xf32>
    %114 = arith.addf %110, %113 : vector<32x128xf32>
    %115 = vector.extract_strided_slice %91 {offsets = [1, 0], sizes = [31, 128], strides = [1, 1]} : vector<32x128xf32> to vector<31x128xf32>
    %116 = vector.extract_strided_slice %91 {offsets = [0, 0], sizes = [1, 128], strides = [1, 1]} : vector<32x128xf32> to vector<1x128xf32>
    %117 = tpu.concatenate %115, %116 in 0 : vector<31x128xf32>, vector<1x128xf32> -> vector<32x128xf32>
    %c1_i32_36 = arith.constant 1 : i32
    %118 = vector.broadcast %c1_i32_36 : i32 to vector<32x1xi32>
    %119 = arith.addi %2, %118 : vector<32x1xi32>
    %c0_i32_37 = arith.constant 0 : i32
    %120 = vector.broadcast %c0_i32_37 : i32 to vector<32x1xi32>
    %121 = arith.cmpi sge, %119, %120 : vector<32x1xi32>
    %c1_i32_38 = arith.constant 1 : i32
    %122 = vector.broadcast %c1_i32_38 : i32 to vector<32x1xi32>
    %123 = arith.addi %2, %122 : vector<32x1xi32>
    %c15_i32_39 = arith.constant 15 : i32
    %124 = vector.broadcast %c15_i32_39 : i32 to vector<32x1xi32>
    %125 = arith.cmpi sle, %123, %124 : vector<32x1xi32>
    %126 = arith.andi %121, %125 : vector<32x1xi1>
    %cst_40 = arith.constant 0.000000e+00 : f32
    %127 = vector.shape_cast %126 : vector<32x1xi1> to vector<32x1xi1>
    %128 = vector.broadcast %127 : vector<32x1xi1> to vector<32x128xi1>
    %129 = vector.broadcast %cst_40 : f32 to vector<32x128xf32>
    %130 = arith.select %128, %117, %129 : vector<32x128xi1>, vector<32x128xf32>
    %c256 = arith.constant 256 : index
    %c0_41 = arith.constant 0 : index
    %131 = vector.load %arg4[%c256, %c0_41] : memref<384x128xbf16, #tpu.memory_space<vmem>>, vector<128x128xbf16>
    %132 = arith.truncf %130 : vector<32x128xf32> to vector<32x128xbf16>
    %cst_42 = arith.constant dense<0.000000e+00> : vector<32x128xf32>
    %133 = tpu.matmul %132, %131, %cst_42 {dimension_numbers = #tpu.dot_dimension_numbers<[1], [0], [0], [1], [0, 0, 1, 1], [], []>} : vector<32x128xbf16>, vector<128x128xbf16>, vector<32x128xf32> -> vector<32x128xf32>
    %134 = arith.addf %114, %133 : vector<32x128xf32>
    %c1 = arith.constant 1 : index
    %c0_43 = arith.constant 0 : index
    %135 = vector.load %arg2[%c1, %c0_43] : memref<8x128xf32, #tpu.memory_space<vmem>>, vector<1x16xf32>
    %c4 = arith.constant 4 : index
    %c0_44 = arith.constant 0 : index
    %136 = vector.load %arg2[%c4, %c0_44] : memref<8x128xf32, #tpu.memory_space<vmem>>, vector<1x16xf32>
    %137 = tpu.iota {dimensions = array<i32: 0>} : vector<16x16xi32>
    %138 = tpu.iota {dimensions = array<i32: 1>} : vector<16x16xi32>
    %139 = arith.cmpi eq, %137, %138 : vector<16x16xi32>
    %cst_45 = arith.constant 1.000000e+00 : f32
    %cst_46 = arith.constant 0.000000e+00 : f32
    %140 = vector.broadcast %cst_45 : f32 to vector<16x16xf32>
    %141 = vector.broadcast %cst_46 : f32 to vector<16x16xf32>
    %142 = arith.select %139, %140, %141 : vector<16x16xi1>, vector<16x16xf32>
    %143 = tpu.concatenate %142, %142, %142, %142, %142, %142, %142, %142 in 0 : vector<16x16xf32>, vector<16x16xf32>, vector<16x16xf32>, vector<16x16xf32>, vector<16x16xf32>, vector<16x16xf32>, vector<16x16xf32>, vector<16x16xf32> -> vector<128x16xf32>
    %144 = tpu.concatenate %142, %142, %142, %142, %142, %142, %142, %142 in 1 : vector<16x16xf32>, vector<16x16xf32>, vector<16x16xf32>, vector<16x16xf32>, vector<16x16xf32>, vector<16x16xf32>, vector<16x16xf32>, vector<16x16xf32> -> vector<16x128xf32>
    %cst_47 = arith.constant dense<0.000000e+00> : vector<128xf32>
    %145 = vector.multi_reduction <add>, %134, %cst_47 [0] : vector<32x128xf32> to vector<128xf32>
    %146 = vector.shape_cast %145 : vector<128xf32> to vector<1x128xf32>
    %147 = arith.mulf %134, %134 : vector<32x128xf32>
    %cst_48 = arith.constant dense<0.000000e+00> : vector<128xf32>
    %148 = vector.multi_reduction <add>, %147, %cst_48 [0] : vector<32x128xf32> to vector<128xf32>
    %149 = vector.shape_cast %148 : vector<128xf32> to vector<1x128xf32>
    %150 = tpu.concatenate %146, %149 in 0 : vector<1x128xf32>, vector<1x128xf32> -> vector<2x128xf32>
    %cst_49 = arith.constant dense<0.000000e+00> : vector<2x16xf32>
    %151 = tpu.matmul %150, %143, %cst_49 {dimension_numbers = #tpu.dot_dimension_numbers<[1], [0], [0], [1], [0, 0, 1, 1], [], []>} : vector<2x128xf32>, vector<128x16xf32>, vector<2x16xf32> -> vector<2x16xf32>
    %152 = vector.extract_strided_slice %151 {offsets = [0, 0], sizes = [1, 16], strides = [1, 1]} : vector<2x16xf32> to vector<1x16xf32>
    %cst_50 = arith.constant 3.906250e-03 : f32
    %153 = vector.broadcast %cst_50 : f32 to vector<1x16xf32>
    %154 = arith.mulf %152, %153 : vector<1x16xf32>
    %155 = vector.extract_strided_slice %151 {offsets = [1, 0], sizes = [1, 16], strides = [1, 1]} : vector<2x16xf32> to vector<1x16xf32>
    %cst_51 = arith.constant 3.906250e-03 : f32
    %156 = vector.broadcast %cst_51 : f32 to vector<1x16xf32>
    %157 = arith.mulf %155, %156 : vector<1x16xf32>
    %158 = arith.mulf %154, %154 : vector<1x16xf32>
    %159 = arith.subf %157, %158 : vector<1x16xf32>
    %cst_52 = arith.constant 9.99999974E-6 : f32
    %160 = vector.broadcast %cst_52 : f32 to vector<1x16xf32>
    %161 = arith.addf %159, %160 : vector<1x16xf32>
    %162 = math.rsqrt %161 : vector<1x16xf32>
    %163 = arith.mulf %162, %135 : vector<1x16xf32>
    %164 = arith.mulf %154, %163 : vector<1x16xf32>
    %165 = arith.subf %136, %164 : vector<1x16xf32>
    %166 = tpu.concatenate %163, %165 in 0 : vector<1x16xf32>, vector<1x16xf32> -> vector<2x16xf32>
    %cst_53 = arith.constant dense<0.000000e+00> : vector<2x128xf32>
    %167 = tpu.matmul %166, %144, %cst_53 {dimension_numbers = #tpu.dot_dimension_numbers<[1], [0], [0], [1], [0, 0, 1, 1], [], []>} : vector<2x16xf32>, vector<16x128xf32>, vector<2x128xf32> -> vector<2x128xf32>
    %168 = vector.extract_strided_slice %167 {offsets = [0, 0], sizes = [1, 128], strides = [1, 1]} : vector<2x128xf32> to vector<1x128xf32>
    %169 = vector.broadcast %168 : vector<1x128xf32> to vector<32x128xf32>
    %170 = arith.mulf %134, %169 : vector<32x128xf32>
    %171 = vector.extract_strided_slice %167 {offsets = [1, 0], sizes = [1, 128], strides = [1, 1]} : vector<2x128xf32> to vector<1x128xf32>
    %172 = vector.broadcast %171 : vector<1x128xf32> to vector<32x128xf32>
    %173 = arith.addf %170, %172 : vector<32x128xf32>
    %cst_54 = arith.constant 0.000000e+00 : f32
    %174 = vector.broadcast %cst_54 : f32 to vector<32x128xf32>
    %175 = arith.maximumf %173, %174 : vector<32x128xf32>
    %176 = vector.extract_strided_slice %175 {offsets = [0, 16], sizes = [32, 112], strides = [1, 1]} : vector<32x128xf32> to vector<32x112xf32>
    %177 = vector.extract_strided_slice %175 {offsets = [0, 0], sizes = [32, 16], strides = [1, 1]} : vector<32x128xf32> to vector<32x16xf32>
    %178 = tpu.concatenate %176, %177 in 1 : vector<32x112xf32>, vector<32x16xf32> -> vector<32x128xf32>
    %179 = arith.maximumf %175, %178 : vector<32x128xf32>
    %180 = vector.extract_strided_slice %179 {offsets = [31, 0], sizes = [1, 128], strides = [1, 1]} : vector<32x128xf32> to vector<1x128xf32>
    %181 = vector.extract_strided_slice %179 {offsets = [0, 0], sizes = [31, 128], strides = [1, 1]} : vector<32x128xf32> to vector<31x128xf32>
    %182 = tpu.concatenate %180, %181 in 0 : vector<1x128xf32>, vector<31x128xf32> -> vector<32x128xf32>
    %c-1_i32_55 = arith.constant -1 : i32
    %183 = vector.broadcast %c-1_i32_55 : i32 to vector<32x1xi32>
    %184 = arith.addi %2, %183 : vector<32x1xi32>
    %c0_i32_56 = arith.constant 0 : i32
    %185 = vector.broadcast %c0_i32_56 : i32 to vector<32x1xi32>
    %186 = arith.cmpi sge, %184, %185 : vector<32x1xi32>
    %c-1_i32_57 = arith.constant -1 : i32
    %187 = vector.broadcast %c-1_i32_57 : i32 to vector<32x1xi32>
    %188 = arith.addi %2, %187 : vector<32x1xi32>
    %c15_i32_58 = arith.constant 15 : i32
    %189 = vector.broadcast %c15_i32_58 : i32 to vector<32x1xi32>
    %190 = arith.cmpi sle, %188, %189 : vector<32x1xi32>
    %191 = arith.andi %186, %190 : vector<32x1xi1>
    %cst_59 = arith.constant 0.000000e+00 : f32
    %192 = vector.shape_cast %191 : vector<32x1xi1> to vector<32x1xi1>
    %193 = vector.broadcast %192 : vector<32x1xi1> to vector<32x128xi1>
    %194 = vector.broadcast %cst_59 : f32 to vector<32x128xf32>
    %195 = arith.select %193, %182, %194 : vector<32x128xi1>, vector<32x128xf32>
    %c0_60 = arith.constant 0 : index
    %c0_61 = arith.constant 0 : index
    %196 = vector.load %arg5[%c0_60, %c0_61] : memref<384x128xbf16, #tpu.memory_space<vmem>>, vector<128x128xbf16>
    %197 = arith.truncf %195 : vector<32x128xf32> to vector<32x128xbf16>
    %cst_62 = arith.constant dense<0.000000e+00> : vector<32x128xf32>
    %198 = tpu.matmul %197, %196, %cst_62 {dimension_numbers = #tpu.dot_dimension_numbers<[1], [0], [0], [1], [0, 0, 1, 1], [], []>} : vector<32x128xbf16>, vector<128x128xbf16>, vector<32x128xf32> -> vector<32x128xf32>
    %c128_63 = arith.constant 128 : index
    %c0_64 = arith.constant 0 : index
    %199 = vector.load %arg5[%c128_63, %c0_64] : memref<384x128xbf16, #tpu.memory_space<vmem>>, vector<128x128xbf16>
    %200 = arith.truncf %179 : vector<32x128xf32> to vector<32x128xbf16>
    %cst_65 = arith.constant dense<0.000000e+00> : vector<32x128xf32>
    %201 = tpu.matmul %200, %199, %cst_65 {dimension_numbers = #tpu.dot_dimension_numbers<[1], [0], [0], [1], [0, 0, 1, 1], [], []>} : vector<32x128xbf16>, vector<128x128xbf16>, vector<32x128xf32> -> vector<32x128xf32>
    %202 = arith.addf %198, %201 : vector<32x128xf32>
    %203 = vector.extract_strided_slice %179 {offsets = [1, 0], sizes = [31, 128], strides = [1, 1]} : vector<32x128xf32> to vector<31x128xf32>
    %204 = vector.extract_strided_slice %179 {offsets = [0, 0], sizes = [1, 128], strides = [1, 1]} : vector<32x128xf32> to vector<1x128xf32>
    %205 = tpu.concatenate %203, %204 in 0 : vector<31x128xf32>, vector<1x128xf32> -> vector<32x128xf32>
    %c1_i32_66 = arith.constant 1 : i32
    %206 = vector.broadcast %c1_i32_66 : i32 to vector<32x1xi32>
    %207 = arith.addi %2, %206 : vector<32x1xi32>
    %c0_i32_67 = arith.constant 0 : i32
    %208 = vector.broadcast %c0_i32_67 : i32 to vector<32x1xi32>
    %209 = arith.cmpi sge, %207, %208 : vector<32x1xi32>
    %c1_i32_68 = arith.constant 1 : i32
    %210 = vector.broadcast %c1_i32_68 : i32 to vector<32x1xi32>
    %211 = arith.addi %2, %210 : vector<32x1xi32>
    %c15_i32_69 = arith.constant 15 : i32
    %212 = vector.broadcast %c15_i32_69 : i32 to vector<32x1xi32>
    %213 = arith.cmpi sle, %211, %212 : vector<32x1xi32>
    %214 = arith.andi %209, %213 : vector<32x1xi1>
    %cst_70 = arith.constant 0.000000e+00 : f32
    %215 = vector.shape_cast %214 : vector<32x1xi1> to vector<32x1xi1>
    %216 = vector.broadcast %215 : vector<32x1xi1> to vector<32x128xi1>
    %217 = vector.broadcast %cst_70 : f32 to vector<32x128xf32>
    %218 = arith.select %216, %205, %217 : vector<32x128xi1>, vector<32x128xf32>
    %c256_71 = arith.constant 256 : index
    %c0_72 = arith.constant 0 : index
    %219 = vector.load %arg5[%c256_71, %c0_72] : memref<384x128xbf16, #tpu.memory_space<vmem>>, vector<128x128xbf16>
    %220 = arith.truncf %218 : vector<32x128xf32> to vector<32x128xbf16>
    %cst_73 = arith.constant dense<0.000000e+00> : vector<32x128xf32>
    %221 = tpu.matmul %220, %219, %cst_73 {dimension_numbers = #tpu.dot_dimension_numbers<[1], [0], [0], [1], [0, 0, 1, 1], [], []>} : vector<32x128xbf16>, vector<128x128xbf16>, vector<32x128xf32> -> vector<32x128xf32>
    %222 = arith.addf %202, %221 : vector<32x128xf32>
    %c2 = arith.constant 2 : index
    %c0_74 = arith.constant 0 : index
    %223 = vector.load %arg2[%c2, %c0_74] : memref<8x128xf32, #tpu.memory_space<vmem>>, vector<1x32xf32>
    %c5 = arith.constant 5 : index
    %c0_75 = arith.constant 0 : index
    %224 = vector.load %arg2[%c5, %c0_75] : memref<8x128xf32, #tpu.memory_space<vmem>>, vector<1x32xf32>
    %225 = tpu.iota {dimensions = array<i32: 0>} : vector<32x32xi32>
    %226 = tpu.iota {dimensions = array<i32: 1>} : vector<32x32xi32>
    %227 = arith.cmpi eq, %225, %226 : vector<32x32xi32>
    %cst_76 = arith.constant 1.000000e+00 : f32
    %cst_77 = arith.constant 0.000000e+00 : f32
    %228 = vector.broadcast %cst_76 : f32 to vector<32x32xf32>
    %229 = vector.broadcast %cst_77 : f32 to vector<32x32xf32>
    %230 = arith.select %227, %228, %229 : vector<32x32xi1>, vector<32x32xf32>
    %231 = tpu.concatenate %230, %230, %230, %230 in 0 : vector<32x32xf32>, vector<32x32xf32>, vector<32x32xf32>, vector<32x32xf32> -> vector<128x32xf32>
    %232 = tpu.concatenate %230, %230, %230, %230 in 1 : vector<32x32xf32>, vector<32x32xf32>, vector<32x32xf32>, vector<32x32xf32> -> vector<32x128xf32>
    %cst_78 = arith.constant dense<0.000000e+00> : vector<128xf32>
    %233 = vector.multi_reduction <add>, %222, %cst_78 [0] : vector<32x128xf32> to vector<128xf32>
    %234 = vector.shape_cast %233 : vector<128xf32> to vector<1x128xf32>
    %235 = arith.mulf %222, %222 : vector<32x128xf32>
    %cst_79 = arith.constant dense<0.000000e+00> : vector<128xf32>
    %236 = vector.multi_reduction <add>, %235, %cst_79 [0] : vector<32x128xf32> to vector<128xf32>
    %237 = vector.shape_cast %236 : vector<128xf32> to vector<1x128xf32>
    %238 = tpu.concatenate %234, %237 in 0 : vector<1x128xf32>, vector<1x128xf32> -> vector<2x128xf32>
    %cst_80 = arith.constant dense<0.000000e+00> : vector<2x32xf32>
    %239 = tpu.matmul %238, %231, %cst_80 {dimension_numbers = #tpu.dot_dimension_numbers<[1], [0], [0], [1], [0, 0, 1, 1], [], []>} : vector<2x128xf32>, vector<128x32xf32>, vector<2x32xf32> -> vector<2x32xf32>
    %240 = vector.extract_strided_slice %239 {offsets = [0, 0], sizes = [1, 32], strides = [1, 1]} : vector<2x32xf32> to vector<1x32xf32>
    %cst_81 = arith.constant 7.812500e-03 : f32
    %241 = vector.broadcast %cst_81 : f32 to vector<1x32xf32>
    %242 = arith.mulf %240, %241 : vector<1x32xf32>
    %243 = vector.extract_strided_slice %239 {offsets = [1, 0], sizes = [1, 32], strides = [1, 1]} : vector<2x32xf32> to vector<1x32xf32>
    %cst_82 = arith.constant 7.812500e-03 : f32
    %244 = vector.broadcast %cst_82 : f32 to vector<1x32xf32>
    %245 = arith.mulf %243, %244 : vector<1x32xf32>
    %246 = arith.mulf %242, %242 : vector<1x32xf32>
    %247 = arith.subf %245, %246 : vector<1x32xf32>
    %cst_83 = arith.constant 9.99999974E-6 : f32
    %248 = vector.broadcast %cst_83 : f32 to vector<1x32xf32>
    %249 = arith.addf %247, %248 : vector<1x32xf32>
    %250 = math.rsqrt %249 : vector<1x32xf32>
    %251 = arith.mulf %250, %223 : vector<1x32xf32>
    %252 = arith.mulf %242, %251 : vector<1x32xf32>
    %253 = arith.subf %224, %252 : vector<1x32xf32>
    %254 = tpu.concatenate %251, %253 in 0 : vector<1x32xf32>, vector<1x32xf32> -> vector<2x32xf32>
    %cst_84 = arith.constant dense<0.000000e+00> : vector<2x128xf32>
    %255 = tpu.matmul %254, %232, %cst_84 {dimension_numbers = #tpu.dot_dimension_numbers<[1], [0], [0], [1], [0, 0, 1, 1], [], []>} : vector<2x32xf32>, vector<32x128xf32>, vector<2x128xf32> -> vector<2x128xf32>
    %256 = vector.extract_strided_slice %255 {offsets = [0, 0], sizes = [1, 128], strides = [1, 1]} : vector<2x128xf32> to vector<1x128xf32>
    %257 = vector.broadcast %256 : vector<1x128xf32> to vector<32x128xf32>
    %258 = arith.mulf %222, %257 : vector<32x128xf32>
    %259 = vector.extract_strided_slice %255 {offsets = [1, 0], sizes = [1, 128], strides = [1, 1]} : vector<2x128xf32> to vector<1x128xf32>
    %260 = vector.broadcast %259 : vector<1x128xf32> to vector<32x128xf32>
    %261 = arith.addf %258, %260 : vector<32x128xf32>
    %cst_85 = arith.constant 0.000000e+00 : f32
    %262 = vector.broadcast %cst_85 : f32 to vector<32x128xf32>
    %263 = arith.maximumf %261, %262 : vector<32x128xf32>
    %264 = vector.extract_strided_slice %263 {offsets = [0, 32], sizes = [32, 96], strides = [1, 1]} : vector<32x128xf32> to vector<32x96xf32>
    %265 = vector.extract_strided_slice %263 {offsets = [0, 0], sizes = [32, 32], strides = [1, 1]} : vector<32x128xf32> to vector<32x32xf32>
    %266 = tpu.concatenate %264, %265 in 1 : vector<32x96xf32>, vector<32x32xf32> -> vector<32x128xf32>
    %267 = arith.maximumf %263, %266 : vector<32x128xf32>
    %c0_86 = arith.constant 0 : index
    %c0_87 = arith.constant 0 : index
    %268 = vector.load %arg6[%c0_86, %c0_87] : memref<32x128xf32, #tpu.memory_space<vmem>>, vector<32x128xf32>
    tpu.vector_store %arg6[%c0_86, %c0_87], %267 {strides = array<i32>} : memref<32x128xf32, #tpu.memory_space<vmem>>, vector<32x128xf32>,
    return
  }
  func.func @transform_0(%arg0: i32) -> (i32, i32) {
    %c0_i32 = arith.constant 0 : i32
    %c0_i32_0 = arith.constant 0 : i32
    %c0_i32_1 = arith.constant 0 : i32
    return %c0_i32, %c0_i32_0 : i32, i32
  }
  func.func @transform_1(%arg0: i32) -> (i32, i32) {
    %c0_i32 = arith.constant 0 : i32
    %c0_i32_0 = arith.constant 0 : i32
    %c0_i32_1 = arith.constant 0 : i32
    return %c0_i32, %c0_i32_0 : i32, i32
  }
  func.func @transform_2(%arg0: i32) -> (i32, i32) {
    %c0_i32 = arith.constant 0 : i32
    %c0_i32_0 = arith.constant 0 : i32
    %c0_i32_1 = arith.constant 0 : i32
    return %c0_i32, %c0_i32_0 : i32, i32
  }
  func.func @transform_3(%arg0: i32) -> (i32, i32) {
    %c0_i32 = arith.constant 0 : i32
    %c0_i32_0 = arith.constant 0 : i32
    %c0_i32_1 = arith.constant 0 : i32
    return %c0_i32, %c0_i32_0 : i32, i32
  }
  func.func @transform_4(%arg0: i32) -> (i32, i32) {
    %c0_i32 = arith.constant 0 : i32
    %c0_i32_0 = arith.constant 0 : i32
    %c0_i32_1 = arith.constant 0 : i32
    return %c0_i32, %c0_i32_0 : i32, i32
  }
  func.func @transform_5(%arg0: i32) -> (i32, i32) {
    %c0_i32 = arith.constant 0 : i32
    %c0_i32_0 = arith.constant 0 : i32
    %c0_i32_1 = arith.constant 0 : i32
    return %c0_i32, %c0_i32_0 : i32, i32
  }
}

</mosaic_0001>

<bundles_post_ra>
// kernel: _lambda_.1
= control target key start
LH: loop header
LB: loop body
LE: loop exit
PB: predicated region body
PF: predicated region fallthrough
CT: control target
= control target key end

     0   :  { %10 = vsyncpa [#allocation3], 0  ;;  %s3462_s0 = inlined_call_operand.hbm [shape: f32[32,16], index: 0, kind: input, shape index: {}]   ;;  %s3463_s1 = inlined_call_operand.vmem [shape: f32[8,128], index: 1, kind: input, shape index: {}]   ;;  %s3464_s2 = inlined_call_operand.hbm [shape: bf16[48,128], index: 2, kind: input, shape index: {}]   ;;  %s3465_s3 = inlined_call_operand.hbm [shape: bf16[384,128], index: 3, kind: input, shape index: {}]   ;;  %s3466_s4 = inlined_call_operand.hbm [shape: bf16[384,128], index: 4, kind: input, shape index: {}]   ;;  %s3467_s5 = inlined_call_operand.vmem [shape: f32[32,128], index: 5, kind: output, shape index: {}]  }
   0x1   :  { %11 = vsyncpa [#allocation5], 0 }
   0x2   :  { %12 = vsyncpa [#allocation8], 0  ;;  %s2834_s18 = smov [#allocation4]   ;;  %s2740_s22 = scalar_lea.hbm %s3464_s2, 384 }
   0x3   :  { %s32_s19 = sshll.u32 %s2834_s18, 4  ;;  %p2741_p0 = scmp.ne.s32.totalorder %s3464_s2, %s2740_s22  ;;  %s33_s19 = int_to_ptr.vmem [resolvable:$true] %s32_s19 }
   0x4   :  { %p2744_p1 = scmp.lt.u32.totalorder %s2740_s22, %s3464_s2 }
   0x6   :  { %p2746_p2 = pnand %p2744_p1, %p2741_p0 }
   0x8   :  { %2749 = shalt.err (!%p2746_p2)
}
   0x9   :  { %s2750_s27 = scalar_lea.vmem %s33_s19, 384  ;;  %p2755_p4 = scmp.lt.s32.totalorder %s33_s19, %s33_s19 }
   0xa   :  { %p2751_p3 = scmp.ne.s32.totalorder %s33_s19, %s2750_s27  ;;  %p2756_p5 = scmp.lt.s32.totalorder %s2750_s27, %s2750_s27 }
   0xc   :  { %p2757_p6 = por %p2756_p5, %p2755_p4 }
   0xe   :  { %p2758_p7 = pnand %p2757_p6, %p2751_p3 }
  0x10   :  { %2761 = shalt.err (!%p2758_p7)
}
  0x11   :  { %s2835_s28 = smov 64   ;;  %s2836_s29 = smov 4  }
  0x12   :  { %38 = dma.hbm_to_vmem [thread:$0]  %s3464_s2, 384, %s33_s19, [#allocation5], %s2835_s28, %s2835_s28, %s2836_s29  }
  0x13   :  { %s2837_s7 = smov [#allocation2]   ;;  %s2762_s11 = scalar_lea.hbm %s3462_s0, 512 }
  0x14   :  { %s18_s8 = sshll.u32 %s2837_s7, 4  ;;  %p2763_p8 = scmp.ne.s32.totalorder %s3462_s0, %s2762_s11  ;;  %s19_s8 = int_to_ptr.vmem [resolvable:$true] %s18_s8 }
  0x15   :  { %p2766_p9 = scmp.lt.u32.totalorder %s2762_s11, %s3462_s0 }
  0x17   :  { %p2768_p10 = pnand %p2766_p9, %p2763_p8 }
  0x19   :  { %2771 = shalt.err (!%p2768_p10)
}
  0x1a   :  { %s2772_s16 = scalar_lea.vmem %s19_s8, 512  ;;  %p2777_p12 = scmp.lt.s32.totalorder %s19_s8, %s19_s8 }
  0x1b   :  { %p2773_p11 = scmp.ne.s32.totalorder %s19_s8, %s2772_s16  ;;  %p2778_p13 = scmp.lt.s32.totalorder %s2772_s16, %s2772_s16 }
  0x1d   :  { %p2779_p0 = por %p2778_p13, %p2777_p12 }
  0x1f   :  { %p2780_p1 = pnand %p2779_p0, %p2773_p11 }
  0x21   :  { %2783 = shalt.err (!%p2780_p1)
}
  0x22   :  { %s2838_s2 = smov 128   ;;  %s2839_s17 = smov 8  }
  0x23   :  { %24 = dma.hbm_to_vmem [thread:$0]  %s3462_s0, 512, %s19_s8, [#allocation3], %s2838_s2, %s2838_s2, %s2839_s17  }
  0x24   :  { %s2840_s20 = smov [#allocation6]   ;;  %s2841_s22 = smov [#allocation7]  }
  0x25   :  { %s44_s21 = sshll.u32 %s2840_s20, 4  ;;  %s56_s23 = sshll.u32 %s2841_s22, 4  ;;  %s45_s21 = int_to_ptr.vmem [resolvable:$true] %s44_s21  ;;  %s2919_s23 = int_to_ptr.vmem [resolvable:$true] %s56_s23 }
  0x26   :  { %s2784_s26 = scalar_lea.hbm %s3465_s3, 3072 }
  0x27   :  { %p2785_p2 = scmp.ne.s32.totalorder %s3465_s3, %s2784_s26  ;;  %p2788_p3 = scmp.lt.u32.totalorder %s2784_s26, %s3465_s3 }
  0x29   :  { %p2790_p4 = pnand %p2788_p3, %p2785_p2 }
  0x2b   :  { %2793 = shalt.err (!%p2790_p4)
}
  0x2c   :  { %s2794_s0 = scalar_lea.vmem %s45_s21, 3072  ;;  %p2799_p6 = scmp.lt.s32.totalorder %s45_s21, %s45_s21 }
  0x2d   :  { %p2795_p5 = scmp.ne.s32.totalorder %s45_s21, %s2794_s0  ;;  %p2800_p7 = scmp.lt.s32.totalorder %s2794_s0, %s2794_s0 }
  0x2f   :  { %p2801_p8 = por %p2800_p7, %p2799_p6 }
  0x31   :  { %p2802_p9 = pnand %p2801_p8, %p2795_p5 }
  0x33   :  { %2805 = shalt.err (!%p2802_p9)
}
  0x34   :  { %50 = dma.hbm_to_vmem [thread:$0]  %s3465_s3, 3072, %s45_s21, [#allocation5], %s2835_s28, %s2835_s28, %s2836_s29  }
  0x35   :  { %s2806_s12 = scalar_lea.hbm %s3466_s4, 3072 }
  0x36   :  { %p2807_p10 = scmp.ne.s32.totalorder %s3466_s4, %s2806_s12  ;;  %p2810_p11 = scmp.lt.u32.totalorder %s2806_s12, %s3466_s4 }
  0x38   :  { %p2812_p12 = pnand %p2810_p11, %p2807_p10 }
  0x3a   :  { %2815 = shalt.err (!%p2812_p12)
}
  0x3b   :  { %s2816_s2 = scalar_lea.vmem %s2919_s23, 3072  ;;  %p2821_p0 = scmp.lt.s32.totalorder %s2919_s23, %s2919_s23 }
  0x3c   :  { %p2817_p13 = scmp.ne.s32.totalorder %s2919_s23, %s2816_s2  ;;  %p2822_p1 = scmp.lt.s32.totalorder %s2816_s2, %s2816_s2 }
  0x3e   :  { %p2823_p2 = por %p2822_p1, %p2821_p0 }
  0x40   :  { %p2824_p3 = pnand %p2823_p2, %p2817_p13 }
  0x42   :  { %2827 = shalt.err (!%p2824_p3)
}
  0x43   :  { %62 = dma.hbm_to_vmem [thread:$0]  %s3466_s4, 3072, %s2919_s23, [#allocation8], %s2835_s28, %s2835_s28, %s2836_s29  }
  0x44   :  { %2828 = dma.done.wait [#allocation3], 512  }
  0x45   :  { %2829 = vsyncadd [#allocation3], 4294966784 }
  0x46   :  { %2830 = dma.done.wait [#allocation5], 3456  }
  0x47   :  { %2831 = vsyncadd [#allocation5], 4294963840  ;;  %v76_v0 = vlaneseq }
  0x48   :  { %2832 = dma.done.wait [#allocation8], 3072  }
  0x49   :  { %2833 = vsyncadd [#allocation8], 4294964224  ;;  %v2842_v1 = vmov 0   ;;  %v2956_v2 = vshrl.u32 %v76_v0, 7  ;;  %v2843_v3 = vmov 1   ;;  %v2958_v4 = vand.u32 127, %v76_v0 }
  0x4a   :  { %2646 = vset.pattern.permute.xlu0 %v2842_v1  ;;  %2647 = vset.pattern.permute.xlu1 %v2842_v1  ;;  %vm3468_vm4 = vcmask 130048   ;;  %v2844_v10 = vmov 0.0   ;;  %v2683_v12 = vld [vmem:[#allocation4 + $0x8] sm:$0xff]   ;;  %v79_v13 = vld [vmem:[#allocation2] sm:$0xff]  ;;  %vm89_vm6 = vcmask 1040384   ;;  %v81_v22 = vld [vmem:[#allocation2 + $0x10] sm:$0xff] }
  0x4b   :  { %279 = vperm.xlu1 %2647, %v2843_v3   ;;  %v101_v5 = vadd.s32 4294967295, %v2956_v2  ;;  %v2962_v6 = vadd.s32 8, %v2956_v2  ;;  %vm363_vm1 = vcmp.eq.s32.totalorder %v2956_v2, %v2958_v4  ;;  %v80_v14 = vld [vmem:[#allocation2 + $0x8] sm:$0xff]  ;;  %v90_v16 = vrot.slane %v79_v13, 7  ;;  %v2684_v19 = vld [vmem:[#allocation4] sm:$0xff]   ;;  %2248 = vmatprep.subr.bf16.mxu0 %v2683_v12  ;;  %v82_v23 = vld [vmem:[#allocation2 + $0x18] sm:$0xff] }
  0x4c   :  { %v2983_v11 = vsel %vm363_vm1, 1.0, %v2844_v10  ;;  %v91_v17 = vrot.slane %v80_v14, 7  ;;  %v129_v18 = vpack.c.bf16 %v80_v14, %v79_v13  ;;  %v255_v20 = vrot.slane %v79_v13, 1  ;;  %2249 = vmatpush3.bf16.msra.mxu0 %v2683_v12  ;;  %v2685_v35 = vld [vmem:[#allocation4 + $0x10] sm:$0xff]   ;;  %vm3001_vm8 = vmpackc.low %vm363_vm1, %vm363_vm1  ;;  %s2848_s4 = smov 16   ;;  %s2849_s29 = smov 24  }
  0x4d   :  { %vm103_vm0 = vcmp.ge.s32.totalorder %v101_v5, 0  ;;  %v269_v7 = vadd.s32 1, %v2962_v6  ;;  %vm1056_vm2 = vcmp.eq.s32.totalorder %v2962_v6, %v2958_v4  ;;  %v256_v21 = vrot.slane %v80_v14, 1  ;;  %2254 = vmatprep.subr.bf16.mxu0 %v2684_v19  ;;  %s2851_s19 = smov 40   ;;  %s2852_s20 = smov 48   ;;  %v2733_v56 = vld [vmem:[#allocation7 + $0xb8] sm:$0xff]  }
  0x4e   :  { %v109_v8 = vsel %vm103_vm0, 1, %v2842_v1  ;;  %vm2975_vm3 = vmpackc.low %vm1056_vm2, %vm363_vm1  ;;  %2250 = vmatprep.mubr.msk.bf16.mxu0 %vm3468_vm4, %v129_v18  ;;  %v130_v24 = vpack.c.bf16 %v82_v23, %v81_v22  ;;  %v84_v25 = vrot.slane %v82_v23, 7  ;;  %v93_v26 = vrot.slane %v81_v22, 7  ;;  %s2853_s21 = smov 56   ;;  %s2854_s22 = smov 72  }
  0x4f   :  { %112 = vperm.xlu0 %2646, %v109_v8   ;;  %vm273_vm5 = vcmp.le.s32.totalorder %v269_v7, 15  ;;  %v92_v27 = vsel %vm89_vm6, %v90_v16, %v91_v17  ;;  %vm254_vm7 = vcmask 1046528   ;;  %v258_v31 = vrot.slane %v81_v22, 1  ;;  %s2855_s23 = smov 80   ;;  %s2856_s24 = smov 88  }
  0x50   :  { %v277_v15 = vsel %vm273_vm5, 1, %v2842_v1  ;;  %v94_v28 = vsel %vm89_vm6, %v91_v17, %v93_v26  ;;  %v100_v29 = vsel %vm89_vm6, %v84_v25, %v90_v16  ;;  %v95_v30 = vsel %vm89_vm6, %v93_v26, %v84_v25  ;;  %2251 = vmatmul.mubr.msk.bf16.vlgmr.msra.gmra.mrb[0].mxu0 %vm3468_vm4, %v130_v24  ;;  %s2857_s25 = smov 96   ;;  %s2858_s26 = smov 104  }
  0x51   :  { %282 = vperm.xlu1 %2647, %v277_v15   ;;  %v260_v32 = vrot.slane %v82_v23, 1  ;;  %2255 = vmatpush3.bf16.msra.mxu0 %v2684_v19  ;;  %v257_v33 = vsel %vm254_vm7, %v255_v20, %v256_v21  ;;  %v259_v36 = vsel %vm254_vm7, %v256_v21, %v258_v31  ;;  %v2845_v39 = vmov 0.0|0.0   ;;  %s2859_s27 = smov 112   ;;  %s2860_s30 = smov 120  }
  0x52   :  { %2260 = vmatprep.subr.bf16.mxu0 %v2685_v35  ;;  %2514 = vmatprep.subr.bf16.mxu1 %v2845_v39  ;;  %v2846_v40 = vmov 1.0|1.0   ;;  %vm3470_vm15 = vmmov 0   ;;  %vm416_vm0 = vcmask 261120   ;;  %vm3469_vm1 = vcmask 392192  }
  0x53   :  { %115 = vperm.xlu0 %2646, %v2843_v3   ;;  %v261_v34 = vsel %vm254_vm7, %v258_v31, %v260_v32  ;;  %v267_v37 = vsel %vm254_vm7, %v260_v32, %v255_v20  ;;  %2516 = vmatpush3.bf16.msk.msra.mxu1 %vm3001_vm8, %v2846_v40  ;;  %vm424_vm5 = vcmask 523264  }
  0x54   :  { %2517 = vmatprep.subr.bf16.mxu1 %v2845_v39  ;;  %2298 = vmatprep.mubr.msk.f32.mxu1 %vm3470_vm15, %v2844_v10 }
  0x55   :  { %369 = vrot.lane.b32.xlu1 %v2983_v11, %s2848_s4 }
  0x57   :  { %366 = vrot.lane.b32.xlu0 %v2983_v11, %s2839_s17  ;;  %2519 = vmatpush3.bf16.msk.msra.mxu1 %vm3001_vm8, %v2846_v40  ;;  %s2850_s17 = smov 32  }
  0x58   :  { %2520 = vmatprep.subr.bf16.mxu1 %v2845_v39 }
  0x59   :  { %375 = vrot.lane.b32.xlu1 %v2983_v11, %s2850_s17 }
  0x5b   :  { %2522 = vmatpush3.bf16.msk.msra.mxu1 %vm3001_vm8, %v2846_v40  ;;  %372 = vrot.lane.b32.xlu0 %v2983_v11, %s2849_s29 }
  0x5c   :  { %2523 = vmatprep.subr.bf16.mxu1 %v2845_v39 }
  0x5d   :  { %381 = vrot.lane.b32.xlu1 %v2983_v11, %s2852_s20 }
  0x5f   :  { %2525 = vmatpush3.bf16.msk.msra.mxu1 %vm3001_vm8, %v2846_v40  ;;  %378 = vrot.lane.b32.xlu0 %v2983_v11, %s2851_s19 }
  0x60   :  { %2526 = vmatprep.subr.bf16.mxu1 %v2845_v39 }
  0x61   :  { %387 = vrot.lane.b32.xlu1 %v2983_v11, %s2835_s28 }
  0x63   :  { %2528 = vmatpush3.bf16.msk.msra.mxu1 %vm3001_vm8, %v2846_v40  ;;  %384 = vrot.lane.b32.xlu0 %v2983_v11, %s2853_s21 }
  0x64   :  { %2529 = vmatprep.subr.bf16.mxu1 %v2845_v39 }
  0x65   :  { %393 = vrot.lane.b32.xlu1 %v2983_v11, %s2855_s23 }
  0x67   :  { %2531 = vmatpush3.bf16.msk.msra.mxu1 %vm3001_vm8, %v2846_v40  ;;  %390 = vrot.lane.b32.xlu0 %v2983_v11, %s2854_s22 }
  0x68   :  { %2532 = vmatprep.subr.bf16.mxu1 %v2845_v39 }
  0x69   :  { %399 = vrot.lane.b32.xlu1 %v2983_v11, %s2857_s25 }
  0x6b   :  { %2534 = vmatpush3.bf16.msk.msra.mxu1 %vm3001_vm8, %v2846_v40  ;;  %396 = vrot.lane.b32.xlu0 %v2983_v11, %s2856_s24 }
  0x6c   :  { %2535 = vmatprep.subr.bf16.mxu1 %v2845_v39 }
  0x6d   :  { %405 = vrot.lane.b32.xlu1 %v2983_v11, %s2859_s27 }
  0x6f   :  { %2537 = vmatpush3.bf16.msk.msra.mxu1 %vm3001_vm8, %v2846_v40  ;;  %402 = vrot.lane.b32.xlu0 %v2983_v11, %s2858_s26  ;;  %vm411_vm8 = vcmask 64512  }
  0x70   :  { %2538 = vmatprep.subr.bf16.mxu1 %v2845_v39 }
  0x73   :  { %408 = vrot.lane.b32.xlu0 %v2983_v11, %s2860_s30 }
  0xca   :  { %v280_v41 = vpop.permute.xlu1 %279 }
  0xcb   :  { %vm284_vm9 = vcmp.eq.s32.totalorder %v280_v41, 1 }
  0xcc   :  { %v286_v43 = vsel %vm284_vm9, %v257_v33, 0.0  ;;  %v288_v44 = vsel %vm284_vm9, %v261_v34, 0.0 }
  0xce   :  { %v113_v42 = vpop.permute.xlu0 %112 }
  0xcf   :  { %vm117_vm10 = vcmp.eq.s32.totalorder %v113_v42, 1 }
  0xd0   :  { %v283_v45 = vpop.permute.xlu1 %282  ;;  %v119_v52 = vsel %vm117_vm10, %v100_v29, 0.0  ;;  %v121_v53 = vsel %vm117_vm10, %v94_v28, 0.0 }
  0xd1   :  { %vm285_vm11 = vcmp.eq.s32.totalorder %v283_v45, 1 }
  0xd2   :  { %v116_v46 = vpop.permute.xlu0 %115  ;;  %v287_v47 = vsel %vm285_vm11, %v259_v36, 0.0  ;;  %v289_v48 = vsel %vm285_vm11, %v267_v37, 0.0  ;;  %vm3038_vm12 = vmpackc.low %vm285_vm11, %vm284_vm9  ;;  %vm414_vm9 = vcmask 195584   ;;  %vm422_vm11 = vcmask 457728  }
  0xd3   :  { %vm118_vm13 = vcmp.eq.s32.totalorder %v116_v46, 1  ;;  %v292_v50 = vpack.c.bf16 %v287_v47, %v286_v43  ;;  %v293_v51 = vpack.c.bf16 %v289_v48, %v288_v44 }
  0xd4   :  { %v120_v54 = vsel %vm118_vm13, %v92_v27, 0.0  ;;  %v122_v55 = vsel %vm118_vm13, %v95_v30, 0.0  ;;  %vm3042_vm14 = vmpackc.low %vm118_vm13, %vm117_vm10  ;;  %v370_v18 = vpop.permute.xlu1 %369  ;;  %vm418_vm10 = vcmask 326656   ;;  %vm426_vm13 = vcmask 588800  }
  0xd5   :  { %v125_v57 = vpack.c.bf16 %v120_v54, %v119_v52  ;;  %v126_v58 = vpack.c.bf16 %v122_v55, %v121_v53  ;;  %v1080_v21 = vsel %vm3468_vm4, %v2983_v11, %v370_v18 }
  0xd6   :  { %v367_v38 = vpop.permute.xlu0 %366 }
  0xd7   :  { %2256 = vmatprep.mubr.msk.bf16.mxu0 %vm3468_vm4, %v125_v57  ;;  %v412_v42 = vsel %vm411_vm8, %v2983_v11, %v367_v38  ;;  %v2692_v38 = vld [vmem:[#allocation6 + $0x70] sm:$0xff]  }
  0xd8   :  { %2257 = vmatmul.mubr.msk.bf16.vlgmr.msra.gmra.mrb[0].mxu0 %vm3468_vm4, %v126_v58  ;;  %v376_v24 = vpop.permute.xlu1 %375  ;;  %v413_v43 = vsel %vm3468_vm4, %v412_v42, %v370_v18  ;;  %v3174_v42 = vsub.s32 1, %v2956_v2 }
  0xd9   :  { %2261 = vmatpush3.bf16.msra.mxu0 %v2685_v35  ;;  %2262 = vmatprep.mubr.msk.bf16.mxu0 %vm3468_vm4, %v292_v50  ;;  %v1082_v25 = vsel %vm416_vm0, %v1080_v21, %v376_v24  ;;  %v1736_v33 = vsel %vm416_vm0, %v2983_v11, %v376_v24 }
  0xda   :  { %2301 = vmatprep.subr.mxu0 %v2844_v10  ;;  %v373_v41 = vpop.permute.xlu0 %372 }
  0xdb   :  { %v415_v45 = vsel %vm414_vm9, %v413_v43, %v373_v41  ;;  %vm428_vm9 = vcmask 654336   ;;  %v3171_v41 = vsub.s32 0, %v2956_v2  ;;  %v2693_v43 = vld [vmem:[#allocation6 + $0x78] sm:$0xff]  }
  0xdc   :  { %v382_v29 = vpop.permute.xlu1 %381  ;;  %v417_v46 = vsel %vm416_vm0, %v415_v45, %v376_v24 }
  0xdd   :  { %v1084_v30 = vsel %vm3469_vm1, %v1082_v25, %v382_v29  ;;  %v360_v25 = vld [vmem:[%s3463_s1 + $0x3] sm:$0x1] }
  0xde   :  { %v379_v44 = vpop.permute.xlu0 %378 }
  0xdf   :  { %v419_v48 = vsel %vm418_vm10, %v417_v46, %v379_v44  ;;  %vm432_vm10 = vcmask 785408  }
  0xe0   :  { %v388_v35 = vpop.permute.xlu1 %387  ;;  %v421_v50 = vsel %vm3469_vm1, %v419_v48, %v382_v29  ;;  %vm434_vm1 = vcmask 850944  }
  0xe1   :  { %v3105_v36 = vsel %vm424_vm5, %v1084_v30, %v388_v35  ;;  %v3108_v37 = vsel %vm424_vm5, %v1736_v33, %v388_v35  ;;  %v2686_v30 = vld [vmem:[#allocation6 + $0x40] sm:$0xff]   ;;  %v2689_v33 = vld [vmem:[#allocation6 + $0x58] sm:$0xff]  }
  0xe2   :  { %v385_v47 = vpop.permute.xlu0 %384 }
  0xe3   :  { %v423_v52 = vsel %vm422_vm11, %v421_v50, %v385_v47  ;;  %vm436_vm11 = vcmask 916480  }
  0xe4   :  { %2263 = vmatmul.mubr.msk.bf16.vlgmr.msra.gmra.mrb[0].mxu0 %vm3468_vm4, %v293_v51  ;;  %v3149_v53 = vpop.permute.xlu1 %393  ;;  %v425_v11 = vsel %vm424_vm5, %v423_v52, %v388_v35  ;;  %vm430_vm4 = vcmask 719872   ;;  %v2691_v35 = vld [vmem:[#allocation6 + $0x68] sm:$0xff]  }
  0xe5   :  { %2303 = vmatprep.mubr.msk.f32.mxu0 %vm3470_vm15, %v2844_v10 }
  0xe6   :  { %v391_v51 = vpop.permute.xlu0 %390 }
  0xe7   :  { %v427_v55 = vsel %vm426_vm13, %v425_v11, %v391_v51 }
  0xe8   :  { %v3152_v57 = vpop.permute.xlu1 %399  ;;  %v429_v58 = vsel %vm428_vm9, %v427_v55, %v3149_v53 }
  0xea   :  { %v397_v54 = vpop.permute.xlu0 %396 }
 0x1b7   :  { %v3077_v59 = vpop.f32.mrb[0].mxu0 }
 0x1b8   :  { %v3079_v60 = vpop.f32.mrb[1].mxu0  ;;  %v451_v3 = vmul.f32 %v3077_v59, %v3077_v59 }
 0x1b9   :  { %v3081_v61 = vpop.f32.mrb[2].mxu0  ;;  %v449_v63 = vmul.f32 %v3079_v60, %v3079_v60 }
 0x1ba   :  { %v3083_v62 = vpop.f32.mrb[3].mxu0  ;;  %v452_v8 = vmul.f32 %v3081_v61, %v3081_v61 }
 0x1bb   :  { %v440_v0 = vadd.f32 %v3083_v62, %v3079_v60  ;;  %v450_v1 = vmul.f32 %v3083_v62, %v3083_v62 }
 0x1bd   :  { %v441_v5 = vadd.f32 %v3077_v59, %v440_v0  ;;  %v453_v7 = vadd.f32 %v450_v1, %v449_v63  ;;  %v403_v63 = vpop.permute.xlu0 %402  ;;  %v431_v0 = vsel %vm430_vm4, %v429_v58, %v397_v54  ;;  %vm3481_vm4 = vcmask 130048  }
 0x1be   :  { %v433_v1 = vsel %vm432_vm10, %v431_v0, %v3152_v57 }
 0x1bf   :  { %v442_v12 = vadd.f32 %v3081_v61, %v441_v5  ;;  %v454_v13 = vadd.f32 %v453_v7, %v451_v3  ;;  %v3158_v3 = vpop.permute.xlu1 %405  ;;  %v435_v5 = vsel %vm434_vm1, %v433_v1, %v403_v63  ;;  %v2694_v63 = vld [vmem:[#allocation6] sm:$0xff]   ;;  %vm3483_vm1 = vmmov %vm3481_vm4 }
 0x1c1   :  { %v443_v14 = vrot.slane %v442_v12, 4  ;;  %v455_v15 = vadd.f32 %v454_v13, %v452_v8  ;;  %v409_v7 = vpop.permute.xlu0 %408  ;;  %v437_v8 = vsel %vm436_vm11, %v435_v5, %v3158_v3 }
 0x1c3   :  { %v444_v16 = vadd.f32 %v443_v14, %v442_v12  ;;  %v456_v17 = vrot.slane %v455_v15, 4 }
 0x1c5   :  { %v445_v19 = vrot.slane %v444_v16, 2  ;;  %v457_v20 = vadd.f32 %v456_v17, %v455_v15 }
 0x1c7   :  { %v446_v22 = vadd.f32 %v445_v19, %v444_v16  ;;  %v458_v23 = vrot.slane %v457_v20, 2 }
 0x1c9   :  { %v447_v26 = vrot.slane %v446_v22, 1  ;;  %v459_v27 = vadd.f32 %v458_v23, %v457_v20  ;;  %v359_v20 = vld [vmem:[%s3463_s1] sm:$0x1] }
 0x1ca   :  { %v542_v21 = vrot.slane %v359_v20, 7 }
 0x1cb   :  { %v460_v28 = vrot.slane %v459_v27, 1  ;;  %v448_v31 = vadd.f32 %v447_v26, %v446_v22 }
 0x1cd   :  { %v461_v32 = vadd.f32 %v460_v28, %v459_v27 }
 0x1cf   :  { %v462_v34 = vsel %vm89_vm6, %v448_v31, %v461_v32  ;;  %v2687_v31 = vld [vmem:[#allocation6 + $0x48] sm:$0xff]   ;;  %v2688_v32 = vld [vmem:[#allocation6 + $0x50] sm:$0xff]  }
 0x1d0   :  { %2299 = vmatmul.mubr.f32.vlgmr.msra.gmra.mrb[0].mxu1 %v462_v34  ;;  %v2690_v34 = vld [vmem:[#allocation6 + $0x60] sm:$0xff]  }
 0x1d1   :  { %2540 = vmatpush3.bf16.msk.msra.mxu1 %vm2975_vm3, %v2846_v40  ;;  %2398 = vmatprep.mubr.msk.f32.mxu1 %vm3470_vm15, %v2844_v10  ;;  %vm438_vm15 = vcmask 982016  }
 0x1d2   :  { %2541 = vmatprep.subr.bf16.mxu1 %v2845_v39  ;;  %v439_v12 = vsel %vm438_vm15, %v437_v8, %v409_v7  ;;  %vm3482_vm15 = vcmask 392192  }
 0x1d3   :  { %2302 = vmatpush3.msra.mxu0 %v439_v12 }
 0x1d4   :  { %2306 = vmatprep.subr.bf16.mxu0 %v2686_v30 }
 0x1d5   :  { %2543 = vmatpush3.bf16.msk.msra.mxu1 %vm2975_vm3, %v2846_v40 }
 0x1d6   :  { %2544 = vmatprep.subr.bf16.mxu1 %v2845_v39 }
 0x1d9   :  { %2546 = vmatpush3.bf16.msk.msra.mxu1 %vm2975_vm3, %v2846_v40 }
 0x1da   :  { %2547 = vmatprep.subr.bf16.mxu1 %v2845_v39 }
 0x1dd   :  { %2549 = vmatpush3.bf16.msk.msra.mxu1 %vm2975_vm3, %v2846_v40 }
 0x1de   :  { %2550 = vmatprep.subr.bf16.mxu1 %v2845_v39 }
 0x1e1   :  { %2552 = vmatpush3.bf16.msk.msra.mxu1 %vm2975_vm3, %v2846_v40 }
 0x1e2   :  { %2553 = vmatprep.subr.bf16.mxu1 %v2845_v39 }
 0x1e5   :  { %2555 = vmatpush3.bf16.msk.msra.mxu1 %vm2975_vm3, %v2846_v40 }
 0x1e6   :  { %2556 = vmatprep.subr.bf16.mxu1 %v2845_v39 }
 0x1e9   :  { %2558 = vmatpush3.bf16.msk.msra.mxu1 %vm2975_vm3, %v2846_v40 }
 0x1ea   :  { %2559 = vmatprep.subr.bf16.mxu1 %v2845_v39 }
 0x1ed   :  { %2561 = vmatpush3.bf16.msk.msra.mxu1 %vm2975_vm3, %v2846_v40 }
 0x1ee   :  { %2562 = vmatprep.subr.bf16.mxu1 %v2845_v39 }
 0x2a3   :  { %v529_v13 = vpop.f32.mrb[0].mxu1 }
 0x2a4   :  { %v533_v14 = vmul.f32 0.001953125, %v529_v13  ;;  %v2300_v15 = vpop.f32.mrb[1].mxu1 }
 0x2a6   :  { %v534_v16 = vmul.f32 %v533_v14, %v533_v14 }
 0x2a8   :  { %v536_v17 = vrot.slane %v534_v16, 7 }
 0x2aa   :  { %v538_v18 = vsub.f32 %v533_v14, %v536_v17 }
 0x2ac   :  { %v539_v19 = vadd.f32 1e-05, %v538_v18 }
 0x2ae   :  { %2734 = vrsqrt.f32 %v539_v19 }
 0x2b8   :  { %v2735_v22 = vpop.eup %2734 }
 0x2b9   :  { %v544_v23 = vmul.f32 %v2735_v22, %v542_v21 }
 0x2bb   :  { %v546_v24 = vrot.slane %v544_v23, 1 }
 0x2bd   :  { %v548_v26 = vmul.f32 %v546_v24, %v533_v14 }
 0x2bf   :  { %v549_v27 = vsub.f32 %v360_v25, %v548_v26 }
 0x2c1   :  { %v551_v28 = vrot.slane %v549_v27, 7 }
 0x2c3   :  { %v553_v29 = vsel %vm89_vm6, %v546_v24, %v551_v28 }
 0x2c4   :  { %2304 = vmatmul.mubr.msk.f32.vlgmr.msra.gmra.mrb[4].mxu0 %vm411_vm8, %v553_v29  ;;  %v2695_v29 = vld [vmem:[#allocation6 + $0x8] sm:$0xff]  }
 0x2c5   :  { %2307 = vmatpush3.bf16.msra.mxu0 %v2686_v30 }
 0x2c6   :  { %2308 = vmatprep.subr.bf16.mxu0 %v2687_v31 }
 0x2c9   :  { %2309 = vmatpush3.bf16.msra.mxu0 %v2687_v31 }
 0x2ca   :  { %2310 = vmatprep.subr.bf16.mxu0 %v2688_v32 }
 0x2cd   :  { %2311 = vmatpush3.bf16.msra.mxu0 %v2688_v32 }
 0x2ce   :  { %2312 = vmatprep.subr.bf16.mxu0 %v2689_v33 }
 0x2d1   :  { %2313 = vmatpush3.bf16.msra.mxu0 %v2689_v33  ;;  %v3231_v33 = vsel %vm432_vm10, %v3108_v37, %v3152_v57  ;;  %v2699_v37 = vld [vmem:[#allocation6 + $0x28] sm:$0xff]  }
 0x2d2   :  { %2314 = vmatprep.subr.bf16.mxu0 %v2690_v34 }
 0x2d5   :  { %2315 = vmatpush3.bf16.msra.mxu0 %v2690_v34 }
 0x2d6   :  { %2316 = vmatprep.subr.bf16.mxu0 %v2691_v35 }
 0x2d9   :  { %2317 = vmatpush3.bf16.msra.mxu0 %v2691_v35  ;;  %v2696_v35 = vld [vmem:[#allocation6 + $0x10] sm:$0xff]  }
 0x2da   :  { %2318 = vmatprep.subr.bf16.mxu0 %v2692_v38 }
 0x2dd   :  { %2319 = vmatpush3.bf16.msra.mxu0 %v2692_v38 }
 0x2de   :  { %2320 = vmatprep.subr.bf16.mxu0 %v2693_v43 }
 0x2e1   :  { %2321 = vmatpush3.bf16.msra.mxu0 %v2693_v43  ;;  %v2697_v43 = vld [vmem:[#allocation6 + $0x18] sm:$0xff]  }
 0x2e2   :  { %2326 = vmatprep.subr.bf16.mxu0 %v2694_v63 }
 0x397   :  { %v623_v44 = vpop.f32.mrb[4].mxu0 }
 0x398   :  { %v630_v45 = vrot.slane %v623_v44, %v3171_v41  ;;  %v2305_v46 = vpop.f32.mrb[5].mxu0  ;;  %v638_v47 = vrot.slane %v623_v44, %v3174_v42  ;;  %v2698_v44 = vld [vmem:[#allocation6 + $0x20] sm:$0xff]  }
 0x399   :  { %v2701_v46 = vld [vmem:[#allocation6 + $0x38] sm:$0xff]  }
 0x39a   :  { %v633_v48 = vmul.f32 %v3077_v59, %v630_v45  ;;  %v634_v50 = vmul.f32 %v3081_v61, %v630_v45  ;;  %v631_v51 = vmul.f32 %v630_v45, %v3079_v60  ;;  %v632_v52 = vmul.f32 %v630_v45, %v3083_v62  ;;  %v2700_v45 = vld [vmem:[#allocation6 + $0x30] sm:$0xff]  }
 0x39b   :  { %v3188_v59 = vsel %vm1056_vm2, 1.0, %v2844_v10  ;;  %vm3480_vm2 = vmmov 0  }
 0x39c   :  { %v641_v11 = vadd.f32 %v638_v47, %v633_v48  ;;  %v642_v54 = vadd.f32 %v638_v47, %v634_v50  ;;  %v639_v55 = vadd.f32 %v638_v47, %v631_v51  ;;  %v640_v58 = vadd.f32 %v638_v47, %v632_v52  ;;  %v2702_v52 = vld [vmem:[#allocation6 + $0x80] sm:$0xff]  }
 0x39e   :  { %v645_v0 = vmax.f32 %v641_v11, 0.0  ;;  %v646_v1 = vmax.f32 %v642_v54, 0.0  ;;  %v643_v5 = vmax.f32 %v639_v55, 0.0  ;;  %v644_v7 = vmax.f32 %v640_v58, 0.0 }
 0x3a0   :  { %v2653_v8 = vpack.i.bf16 %v646_v1, %v645_v0  ;;  %v2648_v12 = vpack.i.bf16 %v644_v7, %v643_v5 }
 0x3a2   :  { %2654 = vrot.lane.b32.xlu0 %v2653_v8, %s2860_s30  ;;  %2649 = vrot.lane.b32.xlu1 %v2648_v12, %s2860_s30  ;;  %v2706_v8 = vld [vmem:[#allocation6 + $0xa0] sm:$0xff]   ;;  %v2707_v12 = vld [vmem:[#allocation6 + $0xa8] sm:$0xff]  }
 0x3a6   :  { %1062 = vrot.lane.b32.xlu0 %v3188_v59, %s2850_s17  ;;  %1059 = vrot.lane.b32.xlu1 %v3188_v59, %s2848_s4 }
 0x3aa   :  { %1068 = vrot.lane.b32.xlu0 %v3188_v59, %s2835_s28  ;;  %1065 = vrot.lane.b32.xlu1 %v3188_v59, %s2852_s20 }
 0x3ae   :  { %1074 = vrot.lane.b32.xlu0 %v3188_v59, %s2857_s25  ;;  %1071 = vrot.lane.b32.xlu1 %v3188_v59, %s2855_s23 }
 0x3b2   :  { %1077 = vrot.lane.b32.xlu1 %v3188_v59, %s2859_s27 }
 0x414   :  { %v2655_v6 = vpop.permute.xlu0 %2654  ;;  %v2650_v60 = vpop.permute.xlu1 %2649 }
 0x415   :  { %v2657_v61 = vunpack.i.h.bf16 %v2655_v6  ;;  %v2656_v62 = vunpack.i.l.bf16 %v2655_v6  ;;  %v2652_v13 = vunpack.i.h.bf16 %v2650_v60  ;;  %v2651_v14 = vunpack.i.l.bf16 %v2650_v60  ;;  %v2708_v6 = vld [vmem:[#allocation6 + $0xb0] sm:$0xff]   ;;  %v2709_v60 = vld [vmem:[#allocation6 + $0xb8] sm:$0xff]  }
 0x417   :  { %v3204_v15 = vmax.f32 %v646_v1, %v2657_v61  ;;  %v664_v16 = vmax.f32 %v644_v7, %v2652_v13  ;;  %v3206_v17 = vmax.f32 %v643_v5, %v2651_v14  ;;  %v3210_v19 = vmax.f32 %v645_v0, %v2656_v62  ;;  %v2703_v0 = vld [vmem:[#allocation6 + $0x88] sm:$0xff]   ;;  %v2704_v5 = vld [vmem:[#allocation6 + $0x90] sm:$0xff]   ;;  %v2705_v7 = vld [vmem:[#allocation6 + $0x98] sm:$0xff]  }
 0x418   :  { %v3208_v18 = vpop.permute.xlu0 %1062 }
 0x419   :  { %v668_v20 = vrot.slane %v3204_v15, 7  ;;  %v674_v21 = vrot.slane %v664_v16, 7  ;;  %v673_v22 = vrot.slane %v3206_v17, 7  ;;  %v1737_v23 = vsel %vm416_vm0, %v3188_v59, %v3208_v18 }
 0x41a   :  { %v722_v24 = vpack.c.bf16 %v664_v16, %v3206_v17  ;;  %v723_v27 = vpack.c.bf16 %v3204_v15, %v3210_v19  ;;  %v676_v47 = vrot.slane %v3210_v19, 7  ;;  %v921_v48 = vrot.slane %v3210_v19, 1 }
 0x41b   :  { %v675_v28 = vsel %vm89_vm6, %v673_v22, %v674_v21  ;;  %v683_v30 = vsel %vm89_vm6, %v668_v20, %v673_v22  ;;  %v919_v50 = vrot.slane %v664_v16, 1  ;;  %v918_v51 = vrot.slane %v3206_v17, 1 }
 0x41c   :  { %v3218_v25 = vpop.permute.xlu0 %1068  ;;  %2322 = vmatprep.mubr.bf16.mxu0 %v722_v24  ;;  %v2029_v31 = vpack.c.bf16 %v675_v28, %v683_v30  ;;  %v678_v11 = vsel %vm89_vm6, %v676_v47, %v668_v20  ;;  %v677_v54 = vsel %vm89_vm6, %v674_v21, %v676_v47  ;;  %v923_v61 = vrot.slane %v3204_v15, 1  ;;  %v1060_v15 = vpop.permute.xlu1 %1059 }
 0x41d   :  { %v1741_v26 = vsel %vm424_vm5, %v1737_v23, %v3218_v25  ;;  %2323 = vmatmul.mubr.bf16.vlgmr.msra.gmra.mrb[8].mxu0 %v723_v27  ;;  %v920_v55 = vsel %vm254_vm7, %v918_v51, %v919_v50  ;;  %v922_v58 = vsel %vm254_vm7, %v919_v50, %v921_v48  ;;  %v1081_v20 = vsel %vm3481_vm4, %v3188_v59, %v1060_v15 }
 0x41e   :  { %2327 = vmatpush3.bf16.msra.mxu0 %v2694_v63  ;;  %2342 = vmatprep.mubr.msk.bf16.mxu0 %vm3042_vm14, %v2029_v31  ;;  %v2032_v63 = vpack.c.bf16 %v678_v11, %v677_v54  ;;  %v2043_v1 = vpack.c.bf16 %v922_v58, %v920_v55  ;;  %v924_v62 = vsel %vm254_vm7, %v921_v48, %v923_v61 }
 0x41f   :  { %2328 = vmatprep.subr.bf16.mxu0 %v2695_v29  ;;  %v930_v13 = vsel %vm254_vm7, %v923_v61, %v918_v51  ;;  %v1088_v54 = vsel %vm428_vm9, %v3105_v36, %v3149_v53 }
 0x420   :  { %v3226_v32 = vpop.permute.xlu0 %1074  ;;  %v2046_v14 = vpack.c.bf16 %v930_v13, %v924_v62  ;;  %v1066_v27 = vpop.permute.xlu1 %1065 }
 0x421   :  { %v3237_v34 = vsel %vm432_vm10, %v1741_v26, %v3226_v32  ;;  %v1083_v26 = vsel %vm416_vm0, %v1081_v20, %v3208_v18 }
 0x422   :  { %v2590_v38 = vpack.c.bf16 %v3237_v34, %v3231_v33  ;;  %2329 = vmatpush3.bf16.msra.mxu0 %v2695_v29 }
 0x423   :  { %2330 = vmatprep.subr.bf16.mxu0 %v2696_v35 }
 0x426   :  { %2331 = vmatpush3.bf16.msra.mxu0 %v2696_v35 }
 0x427   :  { %2332 = vmatprep.subr.bf16.mxu0 %v2697_v43 }
 0x42a   :  { %2333 = vmatpush3.bf16.msra.mxu0 %v2697_v43  ;;  %v1085_v43 = vsel %vm3482_vm15, %v1083_v26, %v1066_v27 }
 0x42b   :  { %2334 = vmatprep.subr.bf16.mxu0 %v2698_v44  ;;  %v1087_v18 = vsel %vm424_vm5, %v1085_v43, %v3218_v25  ;;  %v1090_v25 = vsel %vm432_vm10, %v1088_v54, %v3152_v57  ;;  %v2715_v43 = vld [vmem:[#allocation7 + $0x68] sm:$0xff]  }
 0x42e   :  { %2335 = vmatpush3.bf16.msra.mxu0 %v2698_v44 }
 0x42f   :  { %2336 = vmatprep.subr.bf16.mxu0 %v2699_v37 }
 0x432   :  { %2337 = vmatpush3.bf16.msra.mxu0 %v2699_v37 }
 0x433   :  { %2338 = vmatprep.subr.bf16.mxu0 %v2700_v45 }
 0x436   :  { %2339 = vmatpush3.bf16.msra.mxu0 %v2700_v45  ;;  %v1072_v45 = vpop.permute.xlu1 %1071 }
 0x437   :  { %2340 = vmatprep.subr.bf16.mxu0 %v2701_v46  ;;  %v1089_v51 = vsel %vm428_vm9, %v1087_v18, %v1072_v45 }
 0x438   :  { %v1091_v55 = vsel %vm432_vm10, %v1089_v51, %v3226_v32 }
 0x43a   :  { %2341 = vmatpush3.bf16.msra.mxu0 %v2701_v46  ;;  %v1078_v58 = vpop.permute.xlu1 %1077 }
 0x43b   :  { %2346 = vmatprep.subr.bf16.mxu0 %v2702_v52 }
 0x43d   :  { %2343 = vmatmul.mubr.msk.bf16.vlgmr.msra.gmra.mrb[8].mxu0 %vm3042_vm14, %v2032_v63 }
 0x43e   :  { %2347 = vmatpush3.bf16.msra.mxu0 %v2702_v52  ;;  %2362 = vmatprep.mubr.msk.bf16.mxu0 %vm3038_vm12, %v2043_v1 }
 0x43f   :  { %2348 = vmatprep.subr.bf16.mxu0 %v2703_v0 }
 0x442   :  { %2349 = vmatpush3.bf16.msra.mxu0 %v2703_v0 }
 0x443   :  { %2350 = vmatprep.subr.bf16.mxu0 %v2704_v5 }
 0x446   :  { %2351 = vmatpush3.bf16.msra.mxu0 %v2704_v5  ;;  %v1093_v5 = vsel %vm436_vm11, %v1091_v55, %v1078_v58 }
 0x447   :  { %2352 = vmatprep.subr.bf16.mxu0 %v2705_v7 }
 0x44a   :  { %2353 = vmatpush3.bf16.msra.mxu0 %v2705_v7 }
 0x44b   :  { %2354 = vmatprep.subr.bf16.mxu0 %v2706_v8 }
 0x44e   :  { %2355 = vmatpush3.bf16.msra.mxu0 %v2706_v8 }
 0x44f   :  { %2356 = vmatprep.subr.bf16.mxu0 %v2707_v12 }
 0x452   :  { %2357 = vmatpush3.bf16.msra.mxu0 %v2707_v12  ;;  %v1092_v12 = vsel %vm436_vm11, %v1090_v25, %v3158_v3  ;;  %v1054_v3 = vld [vmem:[%s3463_s1 + $0x1] sm:$0x1] }
 0x453   :  { %2358 = vmatprep.subr.bf16.mxu0 %v2708_v6 }
 0x456   :  { %2359 = vmatpush3.bf16.msra.mxu0 %v2708_v6  ;;  %v2563_v6 = vpack.c.bf16 %v1093_v5, %v1092_v12 }
 0x457   :  { %2360 = vmatprep.subr.bf16.mxu0 %v2709_v60 }
 0x45a   :  { %2361 = vmatpush3.bf16.msra.mxu0 %v2709_v60 }
 0x45b   :  { %2565 = vmatprep.subr.bf16.mxu0 %v2845_v39 }
 0x45d   :  { %2363 = vmatmul.mubr.msk.bf16.vlgmr.msra.gmra.mrb[8].mxu0 %vm3038_vm12, %v2046_v14  ;;  %v1196_v14 = vrot.slane %v1054_v3, 7 }
 0x45e   :  { %2567 = vmatpush3.bf16.msk.msra.mxu0 %vm2975_vm3, %v2846_v40  ;;  %2500 = vmatprep.mubr.msk.f32.mxu0 %vm3480_vm2, %v2844_v10 }
 0x45f   :  { %2568 = vmatprep.subr.bf16.mxu0 %v2845_v39 }
 0x530   :  { %v3264_v16 = vpop.f32.mrb[8].mxu0 }
 0x531   :  { %v3266_v17 = vpop.f32.mrb[9].mxu0  ;;  %v1105_v28 = vmul.f32 %v3264_v16, %v3264_v16 }
 0x532   :  { %v3268_v19 = vpop.f32.mrb[10].mxu0  ;;  %v1103_v22 = vmul.f32 %v3266_v17, %v3266_v17 }
 0x533   :  { %v3272_v21 = vpop.f32.mrb[11].mxu0  ;;  %v1106_v30 = vmul.f32 %v3268_v19, %v3268_v19 }
 0x534   :  { %v1094_v23 = vadd.f32 %v3272_v21, %v3266_v17  ;;  %v1104_v24 = vmul.f32 %v3272_v21, %v3272_v21 }
 0x536   :  { %v1095_v59 = vadd.f32 %v3264_v16, %v1094_v23  ;;  %v1107_v29 = vadd.f32 %v1104_v24, %v1103_v22  ;;  %v1055_v23 = vld [vmem:[%s3463_s1 + $0x4] sm:$0x1] }
 0x538   :  { %v1096_v31 = vadd.f32 %v3268_v19, %v1095_v59  ;;  %v1108_v35 = vadd.f32 %v1107_v29, %v1105_v28  ;;  %v2710_v59 = vld [vmem:[#allocation7 + $0x40] sm:$0xff]   ;;  %v2711_v29 = vld [vmem:[#allocation7 + $0x48] sm:$0xff]  }
 0x53a   :  { %v1097_v44 = vrot.slane %v1096_v31, 4  ;;  %v1109_v37 = vadd.f32 %v1108_v35, %v1106_v30  ;;  %v2712_v30 = vld [vmem:[#allocation7 + $0x50] sm:$0xff]   ;;  %v2714_v35 = vld [vmem:[#allocation7 + $0x60] sm:$0xff]  }
 0x53c   :  { %v1098_v46 = vadd.f32 %v1097_v44, %v1096_v31  ;;  %v1110_v47 = vrot.slane %v1109_v37, 4  ;;  %v2713_v31 = vld [vmem:[#allocation7 + $0x58] sm:$0xff]   ;;  %v2716_v44 = vld [vmem:[#allocation7 + $0x70] sm:$0xff]  }
 0x53e   :  { %v1099_v48 = vrot.slane %v1098_v46, 2  ;;  %v1111_v50 = vadd.f32 %v1110_v47, %v1109_v37  ;;  %v2717_v37 = vld [vmem:[#allocation7 + $0x78] sm:$0xff]  }
 0x540   :  { %v1100_v52 = vadd.f32 %v1099_v48, %v1098_v46  ;;  %v1112_v11 = vrot.slane %v1111_v50, 2 }
 0x542   :  { %v1101_v63 = vrot.slane %v1100_v52, 1  ;;  %v1113_v0 = vadd.f32 %v1112_v11, %v1111_v50  ;;  %v2718_v11 = vld [vmem:[#allocation7] sm:$0xff]  }
 0x544   :  { %v1114_v1 = vrot.slane %v1113_v0, 1  ;;  %v1102_v7 = vadd.f32 %v1101_v63, %v1100_v52 }
 0x546   :  { %v1115_v8 = vadd.f32 %v1114_v1, %v1113_v0 }
 0x548   :  { %v1116_v36 = vsel %vm89_vm6, %v1102_v7, %v1115_v8 }
 0x549   :  { %2399 = vmatmul.mubr.f32.vlgmr.msra.gmra.mrb[2].mxu1 %v1116_v36 }
 0x54a   :  { %2564 = vmatpush3.bf16.msra.mxu1 %v2563_v6  ;;  %2405 = vmatprep.mubr.msk.f32.mxu1 %vm3480_vm2, %v2844_v10 }
 0x54b   :  { %2408 = vmatprep.subr.bf16.mxu1 %v2710_v59 }
 0x61c   :  { %v1183_v53 = vpop.f32.mrb[2].mxu1 }
 0x61d   :  { %v1187_v32 = vmul.f32 0.00390625, %v1183_v53  ;;  %v2400_v60 = vpop.f32.mrb[3].mxu1 }
 0x61f   :  { %v1188_v57 = vmul.f32 %v1187_v32, %v1187_v32 }
 0x621   :  { %v1190_v61 = vrot.slane %v1188_v57, 7 }
 0x623   :  { %v1192_v62 = vsub.f32 %v1187_v32, %v1190_v61 }
 0x625   :  { %v1193_v13 = vadd.f32 1e-05, %v1192_v62 }
 0x627   :  { %2736 = vrsqrt.f32 %v1193_v13 }
 0x631   :  { %v2737_v15 = vpop.eup %2736 }
 0x632   :  { %v1198_v20 = vmul.f32 %v2737_v15, %v1196_v14  ;;  %v2719_v15 = vld [vmem:[#allocation7 + $0x8] sm:$0xff]  }
 0x634   :  { %v1200_v22 = vrot.slane %v1198_v20, 1 }
 0x636   :  { %v1202_v24 = vmul.f32 %v1200_v22, %v1187_v32 }
 0x638   :  { %v1203_v26 = vsub.f32 %v1055_v23, %v1202_v24  ;;  %v2721_v23 = vld [vmem:[#allocation7 + $0x18] sm:$0xff]   ;;  %v2722_v24 = vld [vmem:[#allocation7 + $0x20] sm:$0xff]  }
 0x63a   :  { %v1205_v27 = vrot.slane %v1203_v26, 7  ;;  %v2723_v26 = vld [vmem:[#allocation7 + $0x28] sm:$0xff]  }
 0x63c   :  { %v1207_v28 = vsel %vm89_vm6, %v1200_v22, %v1205_v27  ;;  %v2720_v22 = vld [vmem:[#allocation7 + $0x10] sm:$0xff]  }
 0x63d   :  { %2406 = vmatmul.mubr.msk.f32.vlgmr.msra.gmra.mrb[4].mxu1 %vm3483_vm1, %v1207_v28  ;;  %v2724_v27 = vld [vmem:[#allocation7 + $0x30] sm:$0xff]   ;;  %v2725_v28 = vld [vmem:[#allocation7 + $0x38] sm:$0xff]  }
 0x63e   :  { %2409 = vmatpush3.bf16.msra.mxu1 %v2710_v59 }
 0x63f   :  { %2410 = vmatprep.subr.bf16.mxu1 %v2711_v29 }
 0x642   :  { %2411 = vmatpush3.bf16.msra.mxu1 %v2711_v29 }
 0x643   :  { %2412 = vmatprep.subr.bf16.mxu1 %v2712_v30 }
 0x646   :  { %2413 = vmatpush3.bf16.msra.mxu1 %v2712_v30 }
 0x647   :  { %2414 = vmatprep.subr.bf16.mxu1 %v2713_v31 }
 0x64a   :  { %2415 = vmatpush3.bf16.msra.mxu1 %v2713_v31 }
 0x64b   :  { %2416 = vmatprep.subr.bf16.mxu1 %v2714_v35 }
 0x64e   :  { %2417 = vmatpush3.bf16.msra.mxu1 %v2714_v35  ;;  %v2726_v35 = vld [vmem:[#allocation7 + $0x80] sm:$0xff]  }
 0x64f   :  { %2418 = vmatprep.subr.bf16.mxu1 %v2715_v43 }
 0x652   :  { %2419 = vmatpush3.bf16.msra.mxu1 %v2715_v43 }
 0x653   :  { %2420 = vmatprep.subr.bf16.mxu1 %v2716_v44 }
 0x656   :  { %2421 = vmatpush3.bf16.msra.mxu1 %v2716_v44 }
 0x657   :  { %2422 = vmatprep.subr.bf16.mxu1 %v2717_v37 }
 0x65a   :  { %2423 = vmatpush3.bf16.msra.mxu1 %v2717_v37 }
 0x65b   :  { %2428 = vmatprep.subr.bf16.mxu1 %v2718_v11 }
 0x710   :  { %v1277_v18 = vpop.f32.mrb[4].mxu1 }
 0x711   :  { %v1284_v45 = vrot.slane %v1277_v18, %v3171_v41  ;;  %v2407_v46 = vpop.f32.mrb[5].mxu1  ;;  %v1292_v47 = vrot.slane %v1277_v18, %v3174_v42 }
 0x712   :  { %v2727_v46 = vld [vmem:[#allocation7 + $0x88] sm:$0xff]  }
 0x713   :  { %v1287_v48 = vmul.f32 %v3264_v16, %v1284_v45  ;;  %v1288_v50 = vmul.f32 %v3268_v19, %v1284_v45  ;;  %v1285_v51 = vmul.f32 %v1284_v45, %v3266_v17  ;;  %v1286_v52 = vmul.f32 %v1284_v45, %v3272_v21 }
 0x714   :  { %v3322_v16 = vadd.s32 16, %v2956_v2  ;;  %v3325_v17 = vadd.s32 24, %v2956_v2 }
 0x715   :  { %v1295_v54 = vadd.f32 %v1292_v47, %v1287_v48  ;;  %v1296_v55 = vadd.f32 %v1292_v47, %v1288_v50  ;;  %v1293_v58 = vadd.f32 %v1292_v47, %v1285_v51  ;;  %v1294_v63 = vadd.f32 %v1292_v47, %v1286_v52  ;;  %v2728_v48 = vld [vmem:[#allocation7 + $0x90] sm:$0xff]   ;;  %v2729_v50 = vld [vmem:[#allocation7 + $0x98] sm:$0xff]   ;;  %v2730_v51 = vld [vmem:[#allocation7 + $0xa0] sm:$0xff]  }
 0x716   :  { %vm1712_vm8 = vcmp.eq.s32.totalorder %v3322_v16, %v2958_v4  ;;  %vm1713_vm13 = vcmp.eq.s32.totalorder %v3325_v17, %v2958_v4  ;;  %v2731_v52 = vld [vmem:[#allocation7 + $0xa8] sm:$0xff]  }
 0x717   :  { %v1299_v0 = vmax.f32 %v1295_v54, 0.0  ;;  %v1300_v25 = vmax.f32 %v1296_v55, 0.0  ;;  %v1297_v1 = vmax.f32 %v1293_v58, 0.0  ;;  %v1298_v5 = vmax.f32 %v1294_v63, 0.0  ;;  %vm2569_vm9 = vmpackc.low %vm1713_vm13, %vm1712_vm8 }
 0x718   :  { %2570 = vmatpush3.bf16.msk.msra.mxu0 %vm2569_vm9, %v2846_v40 }
 0x719   :  { %v2663_v7 = vpack.i.bf16 %v1300_v25, %v1299_v0  ;;  %v2658_v8 = vpack.i.bf16 %v1298_v5, %v1297_v1  ;;  %2571 = vmatprep.subr.bf16.mxu0 %v2845_v39 }
 0x71b   :  { %2664 = vrot.lane.b32.xlu1 %v2663_v7, %s2859_s27  ;;  %2659 = vrot.lane.b32.xlu0 %v2658_v8, %s2859_s27 }
 0x71c   :  { %2573 = vmatpush3.bf16.msk.msra.mxu0 %vm2975_vm3, %v2846_v40 }
 0x71d   :  { %2574 = vmatprep.subr.bf16.mxu0 %v2845_v39 }
 0x720   :  { %2576 = vmatpush3.bf16.msk.msra.mxu0 %vm2569_vm9, %v2846_v40 }
 0x721   :  { %2577 = vmatprep.subr.bf16.mxu0 %v2845_v39 }
 0x724   :  { %2579 = vmatpush3.bf16.msk.msra.mxu0 %vm2975_vm3, %v2846_v40 }
 0x725   :  { %2580 = vmatprep.subr.bf16.mxu0 %v2845_v39 }
 0x728   :  { %2582 = vmatpush3.bf16.msk.msra.mxu0 %vm2569_vm9, %v2846_v40 }
 0x729   :  { %2583 = vmatprep.subr.bf16.mxu0 %v2845_v39 }
 0x72c   :  { %2585 = vmatpush3.bf16.msk.msra.mxu0 %vm2975_vm3, %v2846_v40 }
 0x72d   :  { %2586 = vmatprep.subr.bf16.mxu0 %v2845_v39 }
 0x730   :  { %2588 = vmatpush3.bf16.msk.msra.mxu0 %vm2569_vm9, %v2846_v40 }
 0x731   :  { %2589 = vmatprep.subr.bf16.mxu0 %v2845_v39 }
 0x78d   :  { %v2665_v2 = vpop.permute.xlu1 %2664  ;;  %v2660_v19 = vpop.permute.xlu0 %2659 }
 0x78e   :  { %v2667_v21 = vunpack.i.h.bf16 %v2665_v2  ;;  %v2666_v12 = vunpack.i.l.bf16 %v2665_v2  ;;  %v2662_v6 = vunpack.i.h.bf16 %v2660_v19  ;;  %v2661_v36 = vunpack.i.l.bf16 %v2660_v19 }
 0x790   :  { %v3357_v53 = vmax.f32 %v1300_v25, %v2667_v21  ;;  %v3359_v32 = vmax.f32 %v1299_v0, %v2666_v12  ;;  %v1318_v60 = vmax.f32 %v1298_v5, %v2662_v6  ;;  %v3361_v57 = vmax.f32 %v1297_v1, %v2661_v36 }
 0x791   :  { %v1714_v0 = vsel %vm1712_vm8, 1.0, %v2844_v10  ;;  %v1715_v25 = vsel %vm1713_vm13, 1.0, %v2844_v10 }
 0x792   :  { %v1322_v9 = vrot.slane %v3357_v53, 7  ;;  %v1328_v61 = vrot.slane %v1318_v60, 7  ;;  %v1327_v40 = vrot.slane %v3361_v57, 7  ;;  %v1376_v62 = vpack.c.bf16 %v1318_v60, %v3361_v57 }
 0x793   :  { %v1377_v13 = vpack.c.bf16 %v3357_v53, %v3359_v32  ;;  %v1330_v59 = vrot.slane %v3359_v32, 7  ;;  %v1575_v29 = vrot.slane %v3359_v32, 1  ;;  %v1573_v30 = vrot.slane %v1318_v60, 1 }
 0x794   :  { %v1329_v3 = vsel %vm89_vm6, %v1327_v40, %v1328_v61  ;;  %v1337_v14 = vsel %vm89_vm6, %v1322_v9, %v1327_v40  ;;  %2424 = vmatprep.mubr.bf16.mxu1 %v1376_v62  ;;  %v1572_v31 = vrot.slane %v3361_v57, 1  ;;  %v1577_v54 = vrot.slane %v3357_v53, 1 }
 0x795   :  { %v2082_v20 = vpack.c.bf16 %v1329_v3, %v1337_v14  ;;  %2425 = vmatmul.mubr.bf16.vlgmr.msra.gmra.mrb[8].mxu1 %v1377_v13  ;;  %v1332_v43 = vsel %vm89_vm6, %v1330_v59, %v1322_v9  ;;  %v1331_v44 = vsel %vm89_vm6, %v1328_v61, %v1330_v59  ;;  %v1576_v18 = vsel %vm254_vm7, %v1573_v30, %v1575_v29 }
 0x796   :  { %2429 = vmatpush3.bf16.msra.mxu1 %v2718_v11  ;;  %v1574_v37 = vsel %vm254_vm7, %v1572_v31, %v1573_v30  ;;  %v2085_v45 = vpack.c.bf16 %v1332_v43, %v1331_v44  ;;  %v2732_v11 = vld [vmem:[#allocation7 + $0xb0] sm:$0xff]   ;;  %v1578_v55 = vsel %vm254_vm7, %v1575_v29, %v1577_v54  ;;  %v1584_v58 = vsel %vm254_vm7, %v1577_v54, %v1572_v31  ;;  %v1709_v54 = vld [vmem:[%s3463_s1 + $0x5] sm:$0x1] }
 0x797   :  { %2444 = vmatprep.mubr.msk.bf16.mxu1 %vm3042_vm14, %v2082_v20  ;;  %2430 = vmatprep.subr.bf16.mxu1 %v2719_v15  ;;  %v2096_v47 = vpack.c.bf16 %v1576_v18, %v1574_v37  ;;  %v2099_v63 = vpack.c.bf16 %v1584_v58, %v1578_v55  ;;  %v2668_v1 = vpack.i.bf16 %v1715_v25, %v1714_v0 }
 0x799   :  { %2669 = vrot.lane.b32.xlu0 %v2668_v1, %s2850_s17  ;;  %2674 = vrot.lane.b32.xlu1 %v2668_v1, %s2835_s28 }
 0x79a   :  { %2431 = vmatpush3.bf16.msra.mxu1 %v2719_v15 }
 0x79b   :  { %2432 = vmatprep.subr.bf16.mxu1 %v2720_v22 }
 0x79d   :  { %2679 = vrot.lane.b32.xlu0 %v2668_v1, %s2857_s25 }
 0x79e   :  { %2433 = vmatpush3.bf16.msra.mxu1 %v2720_v22 }
 0x79f   :  { %2434 = vmatprep.subr.bf16.mxu1 %v2721_v23 }
 0x7a2   :  { %2435 = vmatpush3.bf16.msra.mxu1 %v2721_v23 }
 0x7a3   :  { %2436 = vmatprep.subr.bf16.mxu1 %v2722_v24 }
 0x7a6   :  { %2437 = vmatpush3.bf16.msra.mxu1 %v2722_v24 }
 0x7a7   :  { %2438 = vmatprep.subr.bf16.mxu1 %v2723_v26 }
 0x7aa   :  { %2439 = vmatpush3.bf16.msra.mxu1 %v2723_v26 }
 0x7ab   :  { %2440 = vmatprep.subr.bf16.mxu1 %v2724_v27 }
 0x7ae   :  { %2441 = vmatpush3.bf16.msra.mxu1 %v2724_v27 }
 0x7af   :  { %2442 = vmatprep.subr.bf16.mxu1 %v2725_v28 }
 0x7b2   :  { %2443 = vmatpush3.bf16.msra.mxu1 %v2725_v28 }
 0x7b3   :  { %2448 = vmatprep.subr.bf16.mxu1 %v2726_v35 }
 0x7b5   :  { %2445 = vmatmul.mubr.msk.bf16.vlgmr.msra.gmra.mrb[8].mxu1 %vm3042_vm14, %v2085_v45 }
 0x7b6   :  { %2449 = vmatpush3.bf16.msra.mxu1 %v2726_v35  ;;  %2464 = vmatprep.mubr.msk.bf16.mxu1 %vm3038_vm12, %v2096_v47 }
 0x7b7   :  { %2450 = vmatprep.subr.bf16.mxu1 %v2727_v46 }
 0x7ba   :  { %2451 = vmatpush3.bf16.msra.mxu1 %v2727_v46 }
 0x7bb   :  { %2452 = vmatprep.subr.bf16.mxu1 %v2728_v48 }
 0x7be   :  { %2453 = vmatpush3.bf16.msra.mxu1 %v2728_v48 }
 0x7bf   :  { %2454 = vmatprep.subr.bf16.mxu1 %v2729_v50 }
 0x7c2   :  { %2455 = vmatpush3.bf16.msra.mxu1 %v2729_v50  ;;  %v1708_v50 = vld [vmem:[%s3463_s1 + $0x2] sm:$0x1] }
 0x7c3   :  { %2456 = vmatprep.subr.bf16.mxu1 %v2730_v51 }
 0x7c6   :  { %2457 = vmatpush3.bf16.msra.mxu1 %v2730_v51  ;;  %v1850_v51 = vrot.slane %v1708_v50, 7 }
 0x7c7   :  { %2458 = vmatprep.subr.bf16.mxu1 %v2731_v52 }
 0x7ca   :  { %2459 = vmatpush3.bf16.msra.mxu1 %v2731_v52 }
 0x7cb   :  { %2460 = vmatprep.subr.bf16.mxu1 %v2732_v11 }
 0x7ce   :  { %2461 = vmatpush3.bf16.msra.mxu1 %v2732_v11 }
 0x7cf   :  { %2462 = vmatprep.subr.bf16.mxu1 %v2733_v56 }
 0x7d2   :  { %2463 = vmatpush3.bf16.msra.mxu1 %v2733_v56 }
 0x7d5   :  { %2465 = vmatmul.mubr.msk.bf16.vlgmr.msra.gmra.mrb[8].mxu1 %vm3038_vm12, %v2099_v63 }
 0x80b   :  { %v2670_v23 = vpop.permute.xlu0 %2669  ;;  %v2675_v27 = vpop.permute.xlu1 %2674 }
 0x80c   :  { %v2672_v24 = vunpack.i.h.bf16 %v2670_v23  ;;  %v2671_v26 = vunpack.i.l.bf16 %v2670_v23  ;;  %v2677_v28 = vunpack.i.h.bf16 %v2675_v27  ;;  %v2676_v59 = vunpack.i.l.bf16 %v2675_v27 }
 0x80e   :  { %v1739_v30 = vsel %vm416_vm0, %v1715_v25, %v2672_v24  ;;  %v1738_v31 = vsel %vm416_vm0, %v1714_v0, %v2671_v26 }
 0x80f   :  { %v2680_v29 = vpop.permute.xlu0 %2679  ;;  %v1742_v33 = vsel %vm424_vm5, %v1738_v31, %v2676_v59  ;;  %v1743_v34 = vsel %vm424_vm5, %v1739_v30, %v2677_v28 }
 0x810   :  { %v2682_v35 = vunpack.i.h.bf16 %v2680_v29  ;;  %v2681_v43 = vunpack.i.l.bf16 %v2680_v29 }
 0x8a8   :  { %v3399_v5 = vpop.f32.mrb[8].mxu1 }
 0x8a9   :  { %v3401_v49 = vpop.f32.mrb[9].mxu1  ;;  %v1759_v2 = vmul.f32 %v3399_v5, %v3399_v5 }
 0x8aa   :  { %v3403_v7 = vpop.f32.mrb[10].mxu1  ;;  %v1757_v16 = vmul.f32 %v3401_v49, %v3401_v49 }
 0x8ab   :  { %v3405_v8 = vpop.f32.mrb[11].mxu1  ;;  %v1760_v12 = vmul.f32 %v3403_v7, %v3403_v7 }
 0x8ac   :  { %v1748_v4 = vadd.f32 %v3405_v8, %v3401_v49  ;;  %v1758_v17 = vmul.f32 %v3405_v8, %v3405_v8 }
 0x8ae   :  { %v1749_v19 = vadd.f32 %v3399_v5, %v1748_v4  ;;  %v1761_v21 = vadd.f32 %v1758_v17, %v1757_v16 }
 0x8b0   :  { %v1750_v6 = vadd.f32 %v3403_v7, %v1749_v19  ;;  %v1762_v36 = vadd.f32 %v1761_v21, %v1759_v2 }
 0x8b2   :  { %v1751_v53 = vrot.slane %v1750_v6, 4  ;;  %v1763_v32 = vadd.f32 %v1762_v36, %v1760_v12 }
 0x8b4   :  { %v1752_v60 = vadd.f32 %v1751_v53, %v1750_v6  ;;  %v1764_v57 = vrot.slane %v1763_v32, 4 }
 0x8b6   :  { %v1753_v9 = vrot.slane %v1752_v60, 2  ;;  %v1765_v61 = vadd.f32 %v1764_v57, %v1763_v32 }
 0x8b8   :  { %v1754_v40 = vadd.f32 %v1753_v9, %v1752_v60  ;;  %v1766_v62 = vrot.slane %v1765_v61, 2 }
 0x8ba   :  { %v1755_v13 = vrot.slane %v1754_v40, 1  ;;  %v1767_v3 = vadd.f32 %v1766_v62, %v1765_v61 }
 0x8bc   :  { %v1768_v14 = vrot.slane %v1767_v3, 1  ;;  %v1756_v15 = vadd.f32 %v1755_v13, %v1754_v40 }
 0x8be   :  { %v1769_v20 = vadd.f32 %v1768_v14, %v1767_v3 }
 0x8c0   :  { %v1770_v22 = vsel %vm89_vm6, %v1756_v15, %v1769_v20 }
 0x8c1   :  { %2501 = vmatmul.mubr.f32.vlgmr.msra.gmra.mrb[6].mxu0 %v1770_v22 }
 0x8c2   :  { %2591 = vmatpush3.bf16.msra.mxu0 %v2590_v38  ;;  %2511 = vmatprep.mubr.msk.f32.mxu0 %vm3480_vm2, %v2844_v10  ;;  %v1746_v10 = vsel %vm432_vm10, %v1742_v33, %v2681_v43 }
 0x8c3   :  { %2592 = vmatprep.subr.bf16.mxu0 %v2845_v39  ;;  %v1747_v39 = vsel %vm432_vm10, %v1743_v34, %v2682_v35 }
 0x8c4   :  { %v2593_v38 = vpack.c.bf16 %v1747_v39, %v1746_v10 }
 0x8c6   :  { %2594 = vmatpush3.bf16.msra.mxu0 %v2593_v38 }
 0x994   :  { %v1837_v44 = vpop.f32.mrb[6].mxu0 }
 0x995   :  { %v1841_v37 = vmul.f32 0.0078125, %v1837_v44  ;;  %v2502_v18 = vpop.f32.mrb[7].mxu0 }
 0x997   :  { %v1842_v45 = vmul.f32 %v1841_v37, %v1841_v37 }
 0x999   :  { %v1844_v46 = vrot.slane %v1842_v45, 7 }
 0x99b   :  { %v1846_v47 = vsub.f32 %v1841_v37, %v1844_v46 }
 0x99d   :  { %v1847_v48 = vadd.f32 1e-05, %v1846_v47 }
 0x99f   :  { %2738 = vrsqrt.f32 %v1847_v48 }
 0x9a9   :  { %v2739_v52 = vpop.eup %2738 }
 0x9aa   :  { %v1852_v11 = vmul.f32 %v2739_v52, %v1850_v51 }
 0x9ac   :  { %v1854_v56 = vrot.slane %v1852_v11, 1 }
 0x9ae   :  { %v1856_v55 = vmul.f32 %v1854_v56, %v1841_v37 }
 0x9b0   :  { %v1857_v58 = vsub.f32 %v1709_v54, %v1856_v55 }
 0x9b2   :  { %v1859_v63 = vrot.slane %v1857_v58, 7 }
 0x9b4   :  { %v1861_v0 = vsel %vm89_vm6, %v1854_v56, %v1859_v63 }
 0x9b5   :  { %2512 = vmatmul.mubr.msk.f32.vlgmr.msra.gmra.mrb[12].mxu0 %vm416_vm0, %v1861_v0 }
 0xa88   :  { %v1931_v25 = vpop.f32.mrb[12].mxu0 }
 0xa89   :  { %v1938_v1 = vrot.slane %v1931_v25, %v3171_v41  ;;  %v2513_v16 = vpop.f32.mrb[13].mxu0  ;;  %v1946_v4 = vrot.slane %v1931_v25, %v3174_v42 }
 0xa8b   :  { %v1940_v17 = vmul.f32 %v1938_v1, %v3405_v8  ;;  %v1939_v2 = vmul.f32 %v1938_v1, %v3401_v49  ;;  %v1942_v19 = vmul.f32 %v3403_v7, %v1938_v1  ;;  %v1941_v21 = vmul.f32 %v3399_v5, %v1938_v1 }
 0xa8d   :  { %v1948_v12 = vadd.f32 %v1946_v4, %v1940_v17  ;;  %v1947_v6 = vadd.f32 %v1946_v4, %v1939_v2  ;;  %v1950_v36 = vadd.f32 %v1946_v4, %v1942_v19  ;;  %v1949_v53 = vadd.f32 %v1946_v4, %v1941_v21 }
 0xa8f   :  { %v1952_v32 = vmax.f32 %v1948_v12, 0.0  ;;  %v1951_v60 = vmax.f32 %v1947_v6, 0.0  ;;  %v1954_v41 = vmax.f32 %v1950_v36, 0.0  ;;  %v1953_v42 = vmax.f32 %v1949_v53, 0.0 }
 0xa91   :  { %1961 = vrot.lane.b32.xlu0 %v1952_v32, %s2857_s25  ;;  %1959 = vrot.lane.b32.xlu1 %v1951_v60, %s2857_s25 }
 0xa95   :  { %1965 = vrot.lane.b32.xlu0 %v1954_v41, %s2857_s25  ;;  %1963 = vrot.lane.b32.xlu1 %v1953_v42, %s2857_s25 }
 0xb03   :  { %v1962_v49 = vpop.permute.xlu0 %1961  ;;  %v1960_v7 = vpop.permute.xlu1 %1959 }
 0xb04   :  { %v1972_v8 = vmax.f32 %v1952_v32, %v1962_v49  ;;  %v1971_v5 = vmax.f32 %v1951_v60, %v1960_v7 }
 0xb06   :  { %1976 = vst [vmem:[%s3467_s5 + $0x8] sm:$0xff] %v1972_v8  ;;  %1975 = vst [vmem:[%s3467_s5] sm:$0xff] %v1971_v5 }
 0xb07   :  { %v1966_v57 = vpop.permute.xlu0 %1965  ;;  %v1964_v9 = vpop.permute.xlu1 %1963 }
 0xb08   :  { %v1974_v61 = vmax.f32 %v1954_v41, %v1966_v57  ;;  %v1973_v40 = vmax.f32 %v1953_v42, %v1964_v9 }
 0xb0a   :  { %1978 = vst [vmem:[%s3467_s5 + $0x18] sm:$0xff] %v1974_v61  ;;  %1977 = vst [vmem:[%s3467_s5 + $0x10] sm:$0xff] %v1973_v40 }
 0xb0b   :  { %1983 = vsyncpa [#allocation3], 1 }
 0xb0c   :  { %1984 = vsyncpa [#allocation5], 1 }
 0xb0d   :  { %1985 = vsyncpa [#allocation8], 1 }

</bundles_post_ra>
